<compile_context>
chip_gen: v5e
topology: v5e:2x2
jax: 0.10.0
libtpu: 0.0.40
codegen_flags: <defaults>
</compile_context>

<pallas_src>
import jax
import jax.numpy as jnp
from jax import lax
from jax.experimental import pallas as pl
from jax.experimental.pallas import tpu as pltpu

D_STR = 300   # Matrix_Tree_Layer str_dim_size / h_dim (hard-coded in the module)
D_PAD = 384   # 300 padded to 3*128 so the fused splits are 128-aligned


def _round_up(x, m):
    return (x + m - 1) // m * m


# ----------------------------------------------------------------------------
# Kernel 1: batched Matrix_Tree_Layer projections over a tile of sentence rows.
#   h        = relu(x @ [Wtp | Wtc] + [btp | btc])     (fused tp/tc, width 2*384)
#   tp, tc   = h split at the 128-aligned column 384
#   [inter|root] = tp @ [Wb | wfi]                     (fused, width 384+128)
# root is written as a lane-dense (1, tile_m) row.
# ----------------------------------------------------------------------------
def _mtree_proj_kernel(x_ref, wtptc_ref, btptc_ref, wbfi_ref,
                       tc_ref, inter_ref, root_ref):
    dp = wbfi_ref.shape[0]
    h = jnp.dot(x_ref[...], wtptc_ref[...], preferred_element_type=jnp.float32)
    h = jnp.maximum(h + btptc_ref[...], 0.0)             # (tm, 2*dp) f32
    tp = h[:, :dp]                                        # 128-aligned split
    tc = h[:, dp:]
    ir = jnp.dot(tp.astype(jnp.bfloat16), wbfi_ref[...],
                 preferred_element_type=jnp.float32)      # (tm, dp+128)
    tc_ref[...] = tc.astype(jnp.bfloat16)
    inter_ref[...] = ir[:, :dp].astype(jnp.bfloat16)
    # root column -> lane-dense (1, tm) row (tiny 2-D transpose, no masked store)
    root_ref[...] = jnp.transpose(ir[:, dp:dp + 1], (1, 0))


# ----------------------------------------------------------------------------
# Kernel 2: per-graph scores -> masked Laplacian -> fused inverse -> marginals,
# vectorized over a block of G graphs per grid step.
#   scores   = inter @ tc^T ;  scores^T built by swapping the einsum operands
#   A        = relu(scores)*m_i*m_j + 1e-6, diagonal zeroed (epsilon before zeroing)
#   f        = relu(root)*m + 1e-6
#   L        = diag(col-sums of A) - A ;  L_bar = L with row 0 <- f
#   The GJ inverts L_bar^T directly (built from A^T + f as column 0), so the result is
#   LLinv^T — exactly the layout needed for d0, the diagonal and dx; no in-kernel
#   transpose/relayout of computed data is required.
#   d0       = f * LLinv[:, 0]
#   dx       = mask1 * (A * diag(LLinv)^T) - mask2 * (A * LLinv^T)
# Output packs dx and d0 into one (G, S+1, S) block.
# ----------------------------------------------------------------------------
def _mtree_graph_kernel(tc_ref, inter_ref, root_row_ref, root_col_ref,
                        mrow_ref, mcol_ref, out_ref):
    tc = tc_ref[...]            # (G, S, Dp) bf16
    inter = inter_ref[...]      # (G, S, Dp) bf16
    m_row = mrow_ref[...]       # (G, 1, S) f32
    m_col = mcol_ref[...]       # (G, S, 1) f32
    G, S, _ = tc.shape

    # NOTE: bf16 MXU inputs here feed a matrix inverse; for heavily padded /
    # ill-conditioned graphs consider f32 for this one small matmul.
    scores = jnp.einsum('bsd,btd->bst', inter, tc,
                        preferred_element_type=jnp.float32)    # scores[i,j]
    scoresT = jnp.einsum('bsd,btd->bst', tc, inter,
                         preferred_element_type=jnp.float32)   # scores[j,i]

    row = lax.broadcasted_iota(jnp.int32, (1, S, S), 1)
    col = lax.broadcasted_iota(jnp.int32, (1, S, S), 2)
    eye = (row == col).astype(jnp.float32)
    off_diag = 1.0 - eye
    mprod = m_row * m_col                                      # m[i]*m[j] (symmetric)

    A = (jnp.maximum(scores, 0.0) * mprod + 1e-6) * off_diag   # A[i,j]
    AT = (jnp.maximum(scoresT, 0.0) * mprod + 1e-6) * off_diag  # A[j,i]
    f_row = jnp.maximum(root_row_ref[...], 0.0) * m_row + 1e-6  # (G,1,S)
    f_col = jnp.maximum(root_col_ref[...], 0.0) * m_col + 1e-6  # (G,S,1)

    colsum = jnp.sum(A, axis=1, keepdims=True)                  # torch.sum(A, dim=1)
    Mk = jnp.where(col == 0, f_col, eye * colsum - AT)          # L_bar^T
    Inv = eye + jnp.zeros_like(Mk)

    # Gauss-Jordan with diagonal pivots (no partial pivoting), vectorized over the G
    # graphs.  The 1e-6-regularized Laplacian keeps pivots away from zero for valid
    # graphs; numerics are re-validated against jnp.linalg.inv in __main__.
    # TODO(synk): switch to lax.fori_loop + dynamic slices once S grows beyond ~32.
    for k in range(S):
        inv_piv = 1.0 / Mk[:, k:k + 1, k:k + 1]                 # (G,1,1), one divide/step
        pr_m = Mk[:, k:k + 1, :] * inv_piv                      # (G,1,S)
        pr_i = Inv[:, k:k + 1, :] * inv_piv
        is_k = row[:, :, 0:1] == k                              # (1,S,1)
        fac = jnp.where(is_k, 0.0, Mk[:, :, k:k + 1])           # (G,S,1)
        Mk = jnp.where(is_k, pr_m, Mk - fac * pr_m)
        Inv = jnp.where(is_k, pr_i, Inv - fac * pr_i)
    inv_T = Inv                                                 # inv_T[i,j] = LLinv[j,i]

    diag_row = jnp.sum(inv_T * eye, axis=1, keepdims=True)      # LLinv[j,j] as (G,1,S)
    d0_row = f_row * inv_T[:, 0:1, :]                           # f[j]*LLinv[j,0]
    mask1 = (col != 0).astype(jnp.float32)                      # zero column 0
    mask2 = (row != 0).astype(jnp.float32)                      # zero row 0
    dx = mask1 * (A * diag_row) - mask2 * (A * inv_T)

    out_ref[...] = jnp.concatenate([dx, d0_row], axis=1)        # (G, S+1, S)


# ----------------------------------------------------------------------------
# Kernel 3: fused node/topic projection + wh/wh1 heads (single tiny call).
#   proj  = [node_rows; topic_rows] @ Wproj               (n_feature_proj, no bias)
#   heads = proj @ [Wwh1 | Wwh | 0pad] + [bwh1 | bwh | 0]  (width padded to 384)
# ----------------------------------------------------------------------------
def _feature_heads_kernel(rows_ref, wproj_ref, whh_ref, bhh_ref, proj_ref, heads_ref):
    proj = jnp.dot(rows_ref[...], wproj_ref[...], preferred_element_type=jnp.float32)
    heads = jnp.dot(proj.astype(jnp.bfloat16), whh_ref[...],
                    preferred_element_type=jnp.float32) + bhh_ref[...]
    proj_ref[...] = proj
    heads_ref[...] = heads


# ----------------------------------------------------------------------------
# Matrix_Tree_Layer wrapper
# ----------------------------------------------------------------------------
def matrix_tree_layer(sent_vecs, pad_mask, p, *, tile_m=256, graphs_per_block=16):
    B, S, D = sent_vecs.shape
    Dp = p["wtptc"].shape[0]
    n_tptc = p["wtptc"].shape[1]
    n_bfi = p["wbfi"].shape[1]

    M = B * S
    Mp = _round_up(M, 8)
    tm = Mp if Mp <= tile_m else tile_m
    Mp = _round_up(Mp, tm)

    x = sent_vecs.reshape(M, D)
    x = jnp.pad(x, ((0, Mp - M), (0, Dp - D))).astype(jnp.bfloat16)

    tc, inter, root = pl.pallas_call(
        _mtree_proj_kernel,
        grid=(Mp // tm,),
        in_specs=[pl.BlockSpec((tm, Dp), lambda i: (i, 0)),
                  pl.BlockSpec((Dp, n_tptc), lambda i: (0, 0)),
                  pl.BlockSpec((1, n_tptc), lambda i: (0, 0)),
                  pl.BlockSpec((Dp, n_bfi), lambda i: (0, 0))],
        out_specs=[pl.BlockSpec((tm, Dp), lambda i: (i, 0)),
                   pl.BlockSpec((tm, Dp), lambda i: (i, 0)),
                   pl.BlockSpec((1, tm), lambda i: (0, i))],
        out_shape=(jax.ShapeDtypeStruct((Mp, Dp), jnp.bfloat16),
                   jax.ShapeDtypeStruct((Mp, Dp), jnp.bfloat16),
                   jax.ShapeDtypeStruct((1, Mp), jnp.float32)),
        compiler_params=pltpu.CompilerParams(dimension_semantics=("parallel",)),
    )(x, p["wtptc"], p["btptc"], p["wbfi"])

    tc = tc[:M].reshape(B, S, Dp)
    inter = inter[:M].reshape(B, S, Dp)
    root_flat = root[0, :M]
    root_row = root_flat.reshape(B, 1, S)
    root_col = root_flat.reshape(B, S, 1)
    mask = pad_mask.reshape(B, S).astype(jnp.float32)
    mask_row = mask.reshape(B, 1, S)
    mask_col = mask.reshape(B, S, 1)

    gb = B if B <= graphs_per_block else graphs_per_block
    Bp = _round_up(B, gb)
    if Bp != B:
        pad = ((0, Bp - B), (0, 0), (0, 0))
        tc, inter = jnp.pad(tc, pad), jnp.pad(inter, pad)
        root_row, root_col = jnp.pad(root_row, pad), jnp.pad(root_col, pad)
        mask_row, mask_col = jnp.pad(mask_row, pad), jnp.pad(mask_col, pad)

    flops = int(Bp * (4 * S * S * Dp + 6 * S ** 3 + 32 * S * S))
    bytes_accessed = int(Bp * (2 * S * Dp * 2 + 4 * S * 4 + (S + 1) * S * 4))
    out = pl.pallas_call(
        _mtree_graph_kernel,
        grid=(Bp // gb,),
        in_specs=[pl.BlockSpec((gb, S, Dp), lambda i: (i, 0, 0)),
                  pl.BlockSpec((gb, S, Dp), lambda i: (i, 0, 0)),
                  pl.BlockSpec((gb, 1, S), lambda i: (i, 0, 0)),
                  pl.BlockSpec((gb, S, 1), lambda i: (i, 0, 0)),
                  pl.BlockSpec((gb, 1, S), lambda i: (i, 0, 0)),
                  pl.BlockSpec((gb, S, 1), lambda i: (i, 0, 0))],
        out_specs=pl.BlockSpec((gb, S + 1, S), lambda i: (i, 0, 0)),
        out_shape=jax.ShapeDtypeStruct((Bp, S + 1, S), jnp.float32),
        compiler_params=pltpu.CompilerParams(dimension_semantics=("parallel",)),
        cost_estimate=pl.CostEstimate(flops=flops, transcendentals=int(Bp * S),
                                      bytes_accessed=bytes_accessed),
    )(tc, inter, root_row, root_col, mask_row, mask_col)

    dx = out[:B, :S, :]
    d0 = out[:B, S, :]
    return dx, d0


def feature_heads(node_feature, topi_feature, p):
    # TODO(synk): tiny (R~24) matmuls; could equally be left to plain XLA.
    rows = jnp.concatenate([node_feature, topi_feature], axis=0)
    R, din = rows.shape
    Rp = _round_up(R, 8)
    rows = jnp.pad(rows, ((0, Rp - R), (0, 0))).astype(jnp.bfloat16)
    hidden = p["n_feature_proj_w_bf16"].shape[1]
    hw = p["whh_w"].shape[1]
    proj, heads = pl.pallas_call(
        _feature_heads_kernel,
        grid=(1,),
        in_specs=[pl.BlockSpec((Rp, din), lambda i: (0, 0)),
                  pl.BlockSpec((din, hidden), lambda i: (0, 0)),
                  pl.BlockSpec((hidden, hw), lambda i: (0, 0)),
                  pl.BlockSpec((1, hw), lambda i: (0, 0))],
        out_specs=[pl.BlockSpec((Rp, hidden), lambda i: (0, 0)),
                   pl.BlockSpec((Rp, hw), lambda i: (0, 0))],
        out_shape=(jax.ShapeDtypeStruct((Rp, hidden), jnp.float32),
                   jax.ShapeDtypeStruct((Rp, hw), jnp.float32)),
    )(rows, p["n_feature_proj_w_bf16"], p["whh_w"], p["whh_b"])
    return proj[:R], heads[:R]


# ----------------------------------------------------------------------------
# HSumGraph forward (implementable subset)
# ----------------------------------------------------------------------------
def hsum_graph_forward(params, word_ids, sent_embedding, pad_mask,
                       node_feature, topi_feature, unpacked_len):
    # set_wnfeature: word-embedding lookup (glue gather)
    word_feature = params["embed"][word_ids]
    # TODO(synk): DGL graph construction, WSWGAT word2sent/sent2word/sent2sent GAT
    # layers, sentEncoder CNN, LSTM/VarGRU and PointerGeneratorNetworks have no
    # reference source; node/topi features are supplied as inputs.

    # settosetEdgfeature: matrix-tree marginals over per-graph sentence embeddings
    dx, d0 = matrix_tree_layer(sent_embedding, pad_mask, params)
    entity_root = d0.reshape(-1)

    N = node_feature.shape[0]
    proj, heads = feature_heads(node_feature, topi_feature, params)
    sent_feature = proj[:N]                 # n_feature_proj(a)
    T_feature = proj[N:]                    # n_feature_proj(b)
    sent_state = sent_feature               # TODO(synk): word2sent GAT output
    sent_state1 = heads[:N, :256]           # wh1(sent_state)
    result = heads[:N, 256:258]             # wh(sent_state)

    # rnn.pad_sequence over per-graph splits (equal lengths -> reshape)
    B = len(unpacked_len)
    reconstructed_unpacked = sent_state1.reshape(B, unpacked_len[0], -1)
    return result, reconstructed_unpacked, entity_root, dx, T_feature, word_feature


# ----------------------------------------------------------------------------
# Deterministic parameter init (shapes from the module's __init__) + fused/padded prep
# ----------------------------------------------------------------------------
def init_params(key, emb_size=64, n_feature_size=64, hidden=64, vocab=100):
    ks = jax.random.split(key, 12)
    s = 0.05
    f32 = jnp.float32
    return {
        # Matrix_Tree_Layer (300-dim, hard-coded in the module)
        "tp_w": s * jax.random.normal(ks[0], (D_STR, D_STR), f32),
        "tp_b": s * jax.random.normal(ks[1], (1, D_STR), f32),
        "tc_w": s * jax.random.normal(ks[2], (D_STR, D_STR), f32),
        "tc_b": s * jax.random.normal(ks[3], (1, D_STR), f32),
        "bilinear_w": s * jax.random.normal(ks[4], (D_STR, D_STR), f32),
        "fi_w": s * jax.random.normal(ks[5], (D_STR, 1), f32),
        # HSumGraph projections
        "n_feature_proj_w": s * jax.random.normal(ks[6], (2 * n_feature_size, hidden), f32),
        "wh_w": s * jax.random.normal(ks[7], (hidden, 2), f32),
        "wh_b": jnp.zeros((1, 2), f32),
        "wh1_w": s * jax.random.normal(ks[8], (hidden, 256), f32),
        "wh1_b": jnp.zeros((1, 256), f32),
        # word / TF embeddings (lookup is glue)
        "embed": s * jax.random.normal(ks[9], (vocab, emb_size), f32),
        "tf_embed": s * jax.random.normal(ks[10], (10, 8), f32),
    }


def prepare_fused_params(p, d=D_STR, dp=D_PAD):
    """Build fused / padded / bf16 weight views once at init time."""
    bf16 = jnp.bfloat16
    f32 = jnp.float32
    q = dict(p)
    # tp|tc fused; K and both N halves zero-padded to 384 so the split is 128-aligned
    wtptc = jnp.zeros((dp, 2 * dp), f32)
    wtptc = wtptc.at[:d, :d].set(p["tp_w"]).at[:d, dp:dp + d].set(p["tc_w"])
    q["wtptc"] = wtptc.astype(bf16)                                   # (384, 768)
    btptc = jnp.zeros((1, 2 * dp), f32)
    btptc = btptc.at[:, :d].set(p["tp_b"]).at[:, dp:dp + d].set(p["tc_b"])
    q["btptc"] = btptc                                                # (1, 768) f32
    # bilinear | fi fused; fi column placed at the 128-aligned offset 384
    wbfi = jnp.zeros((dp, dp + 128), f32)
    wbfi = wbfi.at[:d, :d].set(p["bilinear_w"]).at[:d, dp:dp + 1].set(p["fi_w"])
    q["wbfi"] = wbfi.astype(bf16)                                     # (384, 512)
    q["n_feature_proj_w_bf16"] = p["n_feature_proj_w"].astype(bf16)   # (2F, H)
    hidden = p["wh1_w"].shape[0]
    whh = jnp.zeros((hidden, 384), f32)
    whh = whh.at[:, :256].set(p["wh1_w"]).at[:, 256:258].set(p["wh_w"])
    q["whh_w"] = whh.astype(bf16)                                     # (H, 384)
    bhh = jnp.zeros((1, 384), f32)
    bhh = bhh.at[:, :256].set(p["wh1_b"]).at[:, 256:258].set(p["wh_b"])
    q["whh_b"] = bhh                                                  # (1, 384) f32
    return q


# ----------------------------------------------------------------------------
# Pure-JAX reference for the Matrix_Tree_Layer (same bf16 MXU casts as the kernels,
# f32 linear algebra via jnp.linalg.inv) — used to validate the no-pivot GJ path.
# ----------------------------------------------------------------------------
def matrix_tree_reference(sent_vecs, pad_mask, p):
    bf16, f32 = jnp.bfloat16, jnp.float32
    B, S, _ = sent_vecs.shape
    x = sent_vecs.astype(bf16)
    tp = jnp.maximum(jnp.einsum('bsd,de->bse', x, p["tp_w"].astype(bf16),
                                preferred_element_type=f32) + p["tp_b"], 0.0)
    tc = jnp.maximum(jnp.einsum('bsd,de->bse', x, p["tc_w"].astype(bf16),
                                preferred_element_type=f32) + p["tc_b"], 0.0)
    inter = jnp.einsum('bsd,de->bse', tp.astype(bf16), p["bilinear_w"].astype(bf16),
                       preferred_element_type=f32)
    root = jnp.einsum('bsd,do->bso', tp.astype(bf16), p["fi_w"].astype(bf16),
                      preferred_element_type=f32)[..., 0]
    scores = jnp.einsum('bsd,btd->bst', inter.astype(bf16), tc.astype(bf16),
                        preferred_element_type=f32)
    eye = jnp.eye(S, dtype=f32)
    m = pad_mask.reshape(B, S).astype(f32)
    A = jnp.maximum(scores, 0.0)
    A = (A * m[:, None, :] * m[:, :, None] + 1e-6) * (1.0 - eye)
    f = jnp.maximum(root, 0.0) * m + 1e-6
    L = eye * jnp.sum(A, axis=1, keepdims=True) - A
    L_bar = L.at[:, 0, :].set(f)
    llinv = jnp.linalg.inv(L_bar)
    d0 = f * llinv[:, :, 0]
    diag = jnp.diagonal(llinv, axis1=-2, axis2=-1)
    tmp1 = A * diag[:, None, :]
    tmp2 = A * jnp.swapaxes(llinv, -1, -2)
    mask1 = (jnp.arange(S) != 0).astype(f32)[None, None, :]
    mask2 = (jnp.arange(S) != 0).astype(f32)[None, :, None]
    dx = mask1 * tmp1 - mask2 * tmp2
    return dx, d0


if __name__ == "__main__":
    key = jax.random.PRNGKey(0)
    B, S = 2, 8                  # graphs per batch, sentences per graph
    N = B * S                    # total sentence nodes
    Nt = 8                       # topic/entity nodes
    n_feature_size, hidden, emb_size = 64, 64, 64
    W = 20                       # word nodes

    kp, k1, k2, k3, k4 = jax.random.split(key, 5)
    params = prepare_fused_params(
        init_params(kp, emb_size=emb_size, n_feature_size=n_feature_size, hidden=hidden))

    sent_embedding = jax.random.normal(k1, (B, S, D_STR), jnp.float32)
    pad_mask = jnp.ones((B, S), jnp.float32)              # enc_sent_padding_mask == 1
    node_feature = jax.random.normal(k2, (N, 2 * n_feature_size), jnp.float32)
    topi_feature = jax.random.normal(k3, (Nt, 2 * n_feature_size), jnp.float32)
    word_ids = jax.random.randint(k4, (W,), 0, 100)
    unpacked_len = [S] * B

    outs = hsum_graph_forward(params, word_ids, sent_embedding, pad_mask,
                              node_feature, topi_feature, unpacked_len)
    outs = jax.block_until_ready(outs)
    result, reconstructed, entity_root, dx, T_feature, word_feature = outs

    # shape / finiteness checks
    assert result.shape == (N, 2)
    assert reconstructed.shape == (B, S, 256)
    assert entity_root.shape == (N,)
    assert dx.shape == (B, S, S)
    assert T_feature.shape == (Nt, hidden)
    assert bool(jnp.all(jnp.isfinite(result))) and bool(jnp.all(jnp.isfinite(dx)))
    assert bool(jnp.all(jnp.isfinite(entity_root)))

    # numerics validation of the no-pivot Gauss-Jordan against f32 jnp.linalg.inv
    dx_ref, d0_ref = matrix_tree_reference(sent_embedding, pad_mask, params)
    dx_scale = float(jnp.max(jnp.abs(dx_ref))) + 1e-6
    d0_scale = float(jnp.max(jnp.abs(d0_ref))) + 1e-6
    assert float(jnp.max(jnp.abs(dx - dx_ref))) / dx_scale < 2e-2
    assert float(jnp.max(jnp.abs(entity_root - d0_ref.reshape(-1)))) / d0_scale < 2e-2

    print("KERNEL_OK")
</pallas_src>

<mosaic_0001>
module attributes {stable_mosaic.version = 11 : i64} {
  func.func @_mtree_proj_kernel(%arg0: i32, %arg1: memref<16x384xbf16, #tpu.memory_space<vmem>>, %arg2: memref<384x768xbf16, #tpu.memory_space<vmem>>, %arg3: memref<1x768xf32, #tpu.memory_space<vmem>>, %arg4: memref<384x512xbf16, #tpu.memory_space<vmem>>, %arg5: memref<16x384xbf16, #tpu.memory_space<vmem>>, %arg6: memref<16x384xbf16, #tpu.memory_space<vmem>>, %arg7: memref<1x16xf32, #tpu.memory_space<vmem>>) attributes {dimension_semantics = [#tpu.dimension_semantics<parallel>], iteration_bounds = array<i64: 1>, scalar_prefetch = 0 : i64, scratch_operands = 0 : i64, tpu.core_type = #tpu.core_type<tc>, window_params = [{transform_indices = @transform_0, window_bounds = array<i64: 16, 384>}, {pipeline_mode = #tpu.pipeline_mode<synchronous>, transform_indices = @transform_1, window_bounds = array<i64: 384, 768>}, {pipeline_mode = #tpu.pipeline_mode<synchronous>, transform_indices = @transform_2, window_bounds = array<i64: 1, 768>}, {pipeline_mode = #tpu.pipeline_mode<synchronous>, transform_indices = @transform_3, window_bounds = array<i64: 384, 512>}, {transform_indices = @transform_4, window_bounds = array<i64: 16, 384>}, {transform_indices = @transform_5, window_bounds = array<i64: 16, 384>}, {transform_indices = @transform_6, window_bounds = array<i64: 1, 16>}]} {
    %c0 = arith.constant 0 : index
    %c0_0 = arith.constant 0 : index
    %0 = vector.load %arg1[%c0, %c0_0] : memref<16x384xbf16, #tpu.memory_space<vmem>>, vector<16x384xbf16>
    %c0_1 = arith.constant 0 : index
    %c0_2 = arith.constant 0 : index
    %1 = vector.load %arg2[%c0_1, %c0_2] : memref<384x768xbf16, #tpu.memory_space<vmem>>, vector<384x768xbf16>
    %cst = arith.constant dense<0.000000e+00> : vector<16x768xf32>
    %2 = tpu.matmul %0, %1, %cst {dimension_numbers = #tpu.dot_dimension_numbers<[1], [0], [0], [1], [0, 0, 1, 1], [], []>} : vector<16x384xbf16>, vector<384x768xbf16>, vector<16x768xf32> -> vector<16x768xf32>
    %c0_3 = arith.constant 0 : index
    %c0_4 = arith.constant 0 : index
    %3 = vector.load %arg3[%c0_3, %c0_4] : memref<1x768xf32, #tpu.memory_space<vmem>>, vector<1x768xf32>
    %4 = vector.broadcast %3 : vector<1x768xf32> to vector<16x768xf32>
    %5 = arith.addf %2, %4 : vector<16x768xf32>
    %cst_5 = arith.constant 0.000000e+00 : f32
    %6 = vector.broadcast %cst_5 : f32 to vector<16x768xf32>
    %7 = arith.maximumf %5, %6 : vector<16x768xf32>
    %8 = vector.extract_strided_slice %7 {offsets = [0, 0], sizes = [16, 384], strides = [1, 1]} : vector<16x768xf32> to vector<16x384xf32>
    %9 = vector.extract_strided_slice %7 {offsets = [0, 384], sizes = [16, 384], strides = [1, 1]} : vector<16x768xf32> to vector<16x384xf32>
    %10 = arith.truncf %8 : vector<16x384xf32> to vector<16x384xbf16>
    %c0_6 = arith.constant 0 : index
    %c0_7 = arith.constant 0 : index
    %11 = vector.load %arg4[%c0_6, %c0_7] : memref<384x512xbf16, #tpu.memory_space<vmem>>, vector<384x512xbf16>
    %cst_8 = arith.constant dense<0.000000e+00> : vector<16x512xf32>
    %12 = tpu.matmul %10, %11, %cst_8 {dimension_numbers = #tpu.dot_dimension_numbers<[1], [0], [0], [1], [0, 0, 1, 1], [], []>} : vector<16x384xbf16>, vector<384x512xbf16>, vector<16x512xf32> -> vector<16x512xf32>
    %13 = arith.truncf %9 : vector<16x384xf32> to vector<16x384xbf16>
    %c0_9 = arith.constant 0 : index
    %c0_10 = arith.constant 0 : index
    %14 = vector.load %arg5[%c0_9, %c0_10] : memref<16x384xbf16, #tpu.memory_space<vmem>>, vector<16x384xbf16>
    tpu.vector_store %arg5[%c0_9, %c0_10], %13 {strides = array<i32>} : memref<16x384xbf16, #tpu.memory_space<vmem>>, vector<16x384xbf16>,
    %15 = vector.extract_strided_slice %12 {offsets = [0, 0], sizes = [16, 384], strides = [1, 1]} : vector<16x512xf32> to vector<16x384xf32>
    %16 = arith.truncf %15 : vector<16x384xf32> to vector<16x384xbf16>
    %c0_11 = arith.constant 0 : index
    %c0_12 = arith.constant 0 : index
    %17 = vector.load %arg6[%c0_11, %c0_12] : memref<16x384xbf16, #tpu.memory_space<vmem>>, vector<16x384xbf16>
    tpu.vector_store %arg6[%c0_11, %c0_12], %16 {strides = array<i32>} : memref<16x384xbf16, #tpu.memory_space<vmem>>, vector<16x384xbf16>,
    %18 = vector.extract_strided_slice %12 {offsets = [0, 384], sizes = [16, 1], strides = [1, 1]} : vector<16x512xf32> to vector<16x1xf32>
    %19 = tpu.transpose %18, [1, 0] : vector<16x1xf32> -> vector<1x16xf32>
    %c0_13 = arith.constant 0 : index
    %c0_14 = arith.constant 0 : index
    %20 = vector.load %arg7[%c0_13, %c0_14] : memref<1x16xf32, #tpu.memory_space<vmem>>, vector<1x16xf32>
    tpu.vector_store %arg7[%c0_13, %c0_14], %19 {strides = array<i32>} : memref<1x16xf32, #tpu.memory_space<vmem>>, vector<1x16xf32>,
    return
  }
  func.func @transform_0(%arg0: i32) -> (i32, i32) {
    %c0_i32 = arith.constant 0 : i32
    %c0_i32_0 = arith.constant 0 : i32
    return %arg0, %c0_i32 : i32, i32
  }
  func.func @transform_1(%arg0: i32) -> (i32, i32) {
    %c0_i32 = arith.constant 0 : i32
    %c0_i32_0 = arith.constant 0 : i32
    %c0_i32_1 = arith.constant 0 : i32
    return %c0_i32, %c0_i32_0 : i32, i32
  }
  func.func @transform_2(%arg0: i32) -> (i32, i32) {
    %c0_i32 = arith.constant 0 : i32
    %c0_i32_0 = arith.constant 0 : i32
    %c0_i32_1 = arith.constant 0 : i32
    return %c0_i32, %c0_i32_0 : i32, i32
  }
  func.func @transform_3(%arg0: i32) -> (i32, i32) {
    %c0_i32 = arith.constant 0 : i32
    %c0_i32_0 = arith.constant 0 : i32
    %c0_i32_1 = arith.constant 0 : i32
    return %c0_i32, %c0_i32_0 : i32, i32
  }
  func.func @transform_4(%arg0: i32) -> (i32, i32) {
    %c0_i32 = arith.constant 0 : i32
    %c0_i32_0 = arith.constant 0 : i32
    return %arg0, %c0_i32 : i32, i32
  }
  func.func @transform_5(%arg0: i32) -> (i32, i32) {
    %c0_i32 = arith.constant 0 : i32
    %c0_i32_0 = arith.constant 0 : i32
    return %arg0, %c0_i32 : i32, i32
  }
  func.func @transform_6(%arg0: i32) -> (i32, i32) {
    %c0_i32 = arith.constant 0 : i32
    %c0_i32_0 = arith.constant 0 : i32
    return %c0_i32, %arg0 : i32, i32
  }
}

</mosaic_0001>

<bundles_post_ra>
// kernel: tpu_custom_call.1
= control target key start
LH: loop header
LB: loop body
LE: loop exit
PB: predicated region body
PF: predicated region fallthrough
CT: control target
= control target key end

     0   :  { %12 = vsyncpa [#allocation3], 0  ;;  %s3625_s0 = inlined_call_operand.hbm [shape: bf16[16,384], index: 0, kind: input, shape index: {}]   ;;  %s3626_s1 = inlined_call_operand.hbm [shape: bf16[384,768], index: 1, kind: input, shape index: {}]   ;;  %s3627_s2 = inlined_call_operand.hbm [shape: f32[1,768], index: 2, kind: input, shape index: {}]   ;;  %s3628_s3 = inlined_call_operand.hbm [shape: bf16[384,512], index: 3, kind: input, shape index: {}]   ;;  %s3629_s4 = inlined_call_operand.hbm [shape: bf16[16,384], index: 4, kind: output, shape index: {0}]   ;;  %s3630_s5 = inlined_call_operand.hbm [shape: bf16[16,384], index: 5, kind: output, shape index: {1}]   ;;  %s3631_s6 = inlined_call_operand.hbm [shape: f32[1,16], index: 6, kind: output, shape index: {2}]  }
   0x1   :  { %13 = vsyncpa [#allocation6], 0 }
   0x2   :  { %14 = vsyncpa [#allocation9], 0 }
   0x3   :  { %15 = vsyncpa [#allocation4], 0  ;;  %s34_s23 = sshll.u32 %s3626_s1, 4  ;;  %s35_s23 = int_to_ptr.hbm [resolvable:$true] %s34_s23 }
   0x4   :  { %16 = vsyncpa [#allocation12], 0  ;;  %s3503_s24 = smov [#allocation5]   ;;  %s21_s28 = sshll.u32 %s3625_s0, 4  ;;  %s22_s28 = int_to_ptr.hbm [resolvable:$true] %s21_s28 }
   0x5   :  { %s36_s25 = sshll.u32 %s3503_s24, 4  ;;  %s3504_s29 = smov 384   ;;  %s37_s25 = int_to_ptr.vmem [resolvable:$true] %s36_s25 }
   0x6   :  { %s3505_s30 = smov 24   ;;  %s3506_s7 = smov [#allocation2]  }
   0x7   :  { %42 = dma.hbm_to_vmem [thread:$0]  %s35_s23, 18432, %s37_s25, [#allocation6], %s3504_s29, %s3504_s29, %s3505_s30  }
   0x8   :  { %s23_s8 = sshll.u32 %s3506_s7, 4  ;;  %s3507_s9 = smov 192   ;;  %s24_s8 = int_to_ptr.vmem [resolvable:$true] %s23_s8 }
   0x9   :  { %s3508_s10 = smov 12   ;;  %s48_s12 = sshll.u32 %s3627_s2, 4  ;;  %s49_s12 = int_to_ptr.hbm [resolvable:$true] %s48_s12 }
   0xa   :  { %29 = dma.hbm_to_vmem [thread:$0]  %s22_s28, 384, %s24_s8, [#allocation3], %s3507_s9, %s3507_s9, %s3508_s10  }
   0xb   :  { %s3509_s13 = smov [#allocation7]   ;;  %s58_s16 = sshll.u32 %s3628_s3, 4  ;;  %s59_s16 = int_to_ptr.hbm [resolvable:$true] %s58_s16 }
   0xc   :  { %s50_s0 = sshll.u32 %s3509_s13, 4  ;;  %s3510_s17 = smov [#allocation8]   ;;  %s51_s0 = int_to_ptr.vmem [resolvable:$true] %s50_s0 }
   0xd   :  { %53 = dma.hbm_to_vmem [thread:$0]  %s49_s12, 96, %s51_s0, [#allocation6]  }
   0xe   :  { %s60_s18 = sshll.u32 %s3510_s17, 4  ;;  %s3511_s19 = smov 256   ;;  %s61_s18 = int_to_ptr.vmem [resolvable:$true] %s60_s18 }
   0xf   :  { %s3512_s20 = smov 16  }
  0x10   :  { %66 = dma.hbm_to_vmem [thread:$0]  %s59_s16, 12288, %s61_s18, [#allocation9], %s3511_s19, %s3511_s19, %s3512_s20  }
  0x11   :  { %3493 = dma.done.wait [#allocation3], 384  }
  0x12   :  { %3494 = vsyncadd [#allocation3], 4294966912 }
  0x13   :  { %3495 = dma.done.wait [#allocation6], 18528  }
  0x14   :  { %3496 = vsyncadd [#allocation6], 4294948768 }
  0x15   :  { %3497 = dma.done.wait [#allocation9], 12288  }
  0x16   :  { %3498 = vsyncadd [#allocation9], 4294955008  ;;  %v2278_v0 = vld [vmem:[#allocation5 + $0x150] sm:$0xf]  ;;  %v3116_v1 = vld [vmem:[#allocation5 + $0x164] sm:$0xf0] }
  0x17   :  { %v2470_v2 = vld [vmem:[#allocation5 + $0x2d0] sm:$0xf]  ;;  %v2279_v3 = vor.u32 %v3116_v1, %v2278_v0  ;;  %v3164_v4 = vld [vmem:[#allocation5 + $0x2e4] sm:$0xf0]  ;;  %v2254_v5 = vld [vmem:[#allocation5 + $0x120] sm:$0xf] }
  0x18   :  { %v3110_v6 = vld [vmem:[#allocation5 + $0x134] sm:$0xf0]  ;;  %v2471_v7 = vor.u32 %v3164_v4, %v2470_v2  ;;  %v2446_v8 = vld [vmem:[#allocation5 + $0x2a0] sm:$0xf]  ;;  %v2230_v11 = vld [vmem:[#allocation5 + $0xf0] sm:$0xf] }
  0x19   :  { %v3158_v9 = vld [vmem:[#allocation5 + $0x2b4] sm:$0xf0]  ;;  %981 = vmatpush.bf16.msra.mxu0 %v2279_v3  ;;  %v2255_v10 = vor.u32 %v3110_v6, %v2254_v5  ;;  %v3104_v13 = vld [vmem:[#allocation5 + $0x104] sm:$0xf0]  ;;  %v2662_v14 = vld [vmem:[#allocation5 + $0x450] sm:$0xf] }
  0x1a   :  { %995 = vmatpush.bf16.msra.mxu1 %v2471_v7  ;;  %v2447_v12 = vor.u32 %v3158_v9, %v2446_v8  ;;  %v3212_v15 = vld [vmem:[#allocation5 + $0x464] sm:$0xf0]  ;;  %v2422_v16 = vld [vmem:[#allocation5 + $0x270] sm:$0xf]  ;;  %v2638_v19 = vld [vmem:[#allocation5 + $0x420] sm:$0xf]  ;;  %v2231_v22 = vor.u32 %v3104_v13, %v2230_v11 }
  0x1b   :  { %v3152_v17 = vld [vmem:[#allocation5 + $0x284] sm:$0xf0]  ;;  %v2663_v18 = vor.u32 %v3212_v15, %v2662_v14  ;;  %v3206_v20 = vld [vmem:[#allocation5 + $0x434] sm:$0xf0]  ;;  %v3113_v21 = vld [vmem:[#allocation5 + $0x154] sm:$0xf] }
  0x1c   :  { %v2206_v23 = vld [vmem:[#allocation5 + $0xc0] sm:$0xf]  ;;  %v3098_v24 = vld [vmem:[#allocation5 + $0xd4] sm:$0xf0]  ;;  %v2639_v25 = vor.u32 %v3206_v20, %v2638_v19  ;;  %v2280_v26 = vld [vmem:[#allocation5 + $0x168] sm:$0xf0]  ;;  %v2423_v27 = vor.u32 %v3152_v17, %v2422_v16 }
  0x1d   :  { %982 = vmatpush.bf16.msra.mxu0 %v2255_v10  ;;  %1009 = vmatpush.bf16.msra.mxu2 %v2663_v18  ;;  %v2398_v28 = vld [vmem:[#allocation5 + $0x240] sm:$0xf]  ;;  %v3146_v29 = vld [vmem:[#allocation5 + $0x254] sm:$0xf0]  ;;  %v2283_v30 = vor.u32 %v3113_v21, %v2280_v26  ;;  %v2614_v31 = vld [vmem:[#allocation5 + $0x3f0] sm:$0xf]  ;;  %v2207_v36 = vor.u32 %v3098_v24, %v2206_v23 }
  0x1e   :  { %996 = vmatpush.bf16.msra.mxu1 %v2447_v12  ;;  %v3200_v32 = vld [vmem:[#allocation5 + $0x404] sm:$0xf0]  ;;  %v3107_v33 = vld [vmem:[#allocation5 + $0x124] sm:$0xf]  ;;  %v2256_v34 = vld [vmem:[#allocation5 + $0x138] sm:$0xf0]  ;;  %v2399_v41 = vor.u32 %v3146_v29, %v2398_v28 }
  0x1f   :  { %1023 = vmatpush.bf16.msra.mxu3 %v2283_v30  ;;  %v2259_v35 = vor.u32 %v3107_v33, %v2256_v34  ;;  %v2182_v37 = vld [vmem:[#allocation5 + $0x90] sm:$0xf]  ;;  %v3092_v38 = vld [vmem:[#allocation5 + $0xa4] sm:$0xf0]  ;;  %v2615_v39 = vor.u32 %v3200_v32, %v2614_v31  ;;  %v2590_v40 = vld [vmem:[#allocation5 + $0x3c0] sm:$0xf] }
  0x20   :  { %v3194_v42 = vld [vmem:[#allocation5 + $0x3d4] sm:$0xf0]  ;;  %v3101_v43 = vld [vmem:[#allocation5 + $0xf4] sm:$0xf]  ;;  %v2232_v44 = vld [vmem:[#allocation5 + $0x108] sm:$0xf0]  ;;  %v2183_v48 = vor.u32 %v3092_v38, %v2182_v37 }
  0x21   :  { %983 = vmatpush.bf16.msra.mxu0 %v2231_v22  ;;  %1010 = vmatpush.bf16.msra.mxu2 %v2639_v25  ;;  %v2374_v45 = vld [vmem:[#allocation5 + $0x210] sm:$0xf]  ;;  %v3140_v46 = vld [vmem:[#allocation5 + $0x224] sm:$0xf0]  ;;  %v2235_v47 = vor.u32 %v3101_v43, %v2232_v44  ;;  %v2158_v49 = vld [vmem:[#allocation5 + $0x60] sm:$0xf]  ;;  %v2591_v50 = vor.u32 %v3194_v42, %v2590_v40 }
  0x22   :  { %997 = vmatpush.bf16.msra.mxu1 %v2423_v27  ;;  %v3095_v51 = vld [vmem:[#allocation5 + $0xc4] sm:$0xf]  ;;  %v2208_v52 = vld [vmem:[#allocation5 + $0xd8] sm:$0xf0]  ;;  %v2375_v53 = vor.u32 %v3140_v46, %v2374_v45  ;;  %v3086_v54 = vld [vmem:[#allocation5 + $0x74] sm:$0xf0] }
  0x23   :  { %1024 = vmatpush.bf16.msra.mxu3 %v2259_v35  ;;  %v2566_v55 = vld [vmem:[#allocation5 + $0x390] sm:$0xf]  ;;  %v3188_v56 = vld [vmem:[#allocation5 + $0x3a4] sm:$0xf0]  ;;  %v2350_v57 = vld [vmem:[#allocation5 + $0x1e0] sm:$0xf]  ;;  %v2211_v59 = vor.u32 %v3095_v51, %v2208_v52  ;;  %v2159_v60 = vor.u32 %v3086_v54, %v2158_v49 }
  0x24   :  { %v3134_v58 = vld [vmem:[#allocation5 + $0x1f4] sm:$0xf0]  ;;  %v2134_v61 = vld [vmem:[#allocation5 + $0x30] sm:$0xf]  ;;  %v2567_v62 = vor.u32 %v3188_v56, %v2566_v55  ;;  %v3089_v63 = vld [vmem:[#allocation5 + $0x94] sm:$0xf] }
  0x25   :  { %984 = vmatpush.bf16.msra.mxu0 %v2207_v36  ;;  %1011 = vmatpush.bf16.msra.mxu2 %v2615_v39  ;;  %v2184_v0 = vld [vmem:[#allocation5 + $0xa8] sm:$0xf0]  ;;  %v2351_v1 = vor.u32 %v3134_v58, %v2350_v57  ;;  %v3080_v2 = vld [vmem:[#allocation5 + $0x44] sm:$0xf0]  ;;  %v2542_v3 = vld [vmem:[#allocation5 + $0x360] sm:$0xf] }
  0x26   :  { %998 = vmatpush.bf16.msra.mxu1 %v2399_v41  ;;  %v3182_v4 = vld [vmem:[#allocation5 + $0x374] sm:$0xf0]  ;;  %v2326_v5 = vld [vmem:[#allocation5 + $0x1b0] sm:$0xf]  ;;  %v3128_v6 = vld [vmem:[#allocation5 + $0x1c4] sm:$0xf0]  ;;  %v2187_v8 = vor.u32 %v3089_v63, %v2184_v0  ;;  %v2135_v9 = vor.u32 %v3080_v2, %v2134_v61 }
  0x27   :  { %1025 = vmatpush.bf16.msra.mxu3 %v2235_v47  ;;  %v2110_v7 = vld [vmem:[#allocation5] sm:$0xf]  ;;  %v3074_v10 = vld [vmem:[#allocation5 + $0x14] sm:$0xf0]  ;;  %v2543_v11 = vor.u32 %v3182_v4, %v2542_v3  ;;  %v3083_v12 = vld [vmem:[#allocation5 + $0x64] sm:$0xf]  ;;  %v2327_v14 = vor.u32 %v3128_v6, %v2326_v5 }
  0x28   :  { %v2160_v13 = vld [vmem:[#allocation5 + $0x78] sm:$0xf0]  ;;  %v2302_v15 = vld [vmem:[#allocation5 + $0x180] sm:$0xf]  ;;  %v2518_v16 = vld [vmem:[#allocation5 + $0x330] sm:$0xf]  ;;  %v2111_v25 = vor.u32 %v3074_v10, %v2110_v7 }
  0x29   :  { %985 = vmatpush.bf16.msra.mxu0 %v2183_v48  ;;  %1012 = vmatpush.bf16.msra.mxu2 %v2591_v50  ;;  %v3176_v17 = vld [vmem:[#allocation5 + $0x344] sm:$0xf0]  ;;  %v3122_v18 = vld [vmem:[#allocation5 + $0x194] sm:$0xf0]  ;;  %v3161_v19 = vld [vmem:[#allocation5 + $0x2d4] sm:$0xf]  ;;  %v2163_v23 = vor.u32 %v3083_v12, %v2160_v13 }
  0x2a   :  { %999 = vmatpush.bf16.msra.mxu1 %v2375_v53  ;;  %v2472_v20 = vld [vmem:[#allocation5 + $0x2e8] sm:$0xf0]  ;;  %v3209_v21 = vld [vmem:[#allocation5 + $0x454] sm:$0xf]  ;;  %v2519_v26 = vor.u32 %v3176_v17, %v2518_v16  ;;  %v3155_v27 = vld [vmem:[#allocation5 + $0x2a4] sm:$0xf]  ;;  %v2303_v32 = vor.u32 %v3122_v18, %v2302_v15 }
  0x2b   :  { %1026 = vmatpush.bf16.msra.mxu3 %v2211_v59  ;;  %v2664_v22 = vld [vmem:[#allocation5 + $0x468] sm:$0xf0]  ;;  %v3077_v24 = vld [vmem:[#allocation5 + $0x34] sm:$0xf]  ;;  %v2448_v28 = vld [vmem:[#allocation5 + $0x2b8] sm:$0xf0]  ;;  %v2475_v33 = vor.u32 %v3161_v19, %v2472_v20 }
  0x2c   :  { %v2136_v29 = vld [vmem:[#allocation5 + $0x48] sm:$0xf0]  ;;  %v2098_v30 = vld [vmem:[#allocation2] sm:$0xf]  ;;  %v3069_v31 = vld [vmem:[#allocation2 + $0x8] sm:$0xf0]  ;;  %v2667_v37 = vor.u32 %v3209_v21, %v2664_v22  ;;  %v2451_v51 = vor.u32 %v3155_v27, %v2448_v28 }
  0x2d   :  { %986 = vmatpush.bf16.msra.mxu0 %v2159_v60  ;;  %1013 = vmatpush.bf16.msra.mxu2 %v2567_v62  ;;  %v2494_v34 = vld [vmem:[#allocation5 + $0x300] sm:$0xf]  ;;  %v3170_v35 = vld [vmem:[#allocation5 + $0x314] sm:$0xf0]  ;;  %v3117_v38 = vld [vmem:[#allocation5 + $0x16c] sm:$0xf0]  ;;  %v2139_v43 = vor.u32 %v3077_v24, %v2136_v29  ;;  %v3566_v45 = vor.u32 %v3069_v31, %v2098_v30 }
  0x2e   :  { %1000 = vmatpush.bf16.msra.mxu1 %v2351_v1  ;;  %v2286_v36 = vld [vmem:[#allocation5 + $0x158] sm:$0xf]  ;;  %v3068_v39 = vld [vmem:[#allocation2 + $0x4] sm:$0xf]  ;;  %v3203_v41 = vld [vmem:[#allocation5 + $0x424] sm:$0xf]  ;;  %v2495_v46 = vor.u32 %v3170_v35, %v2494_v34 }
  0x2f   :  { %1027 = vmatpush.bf16.msra.mxu3 %v2187_v8  ;;  %v2100_v40 = vld [vmem:[#allocation2 + $0xc] sm:$0xf0]  ;;  %v2640_v42 = vld [vmem:[#allocation5 + $0x438] sm:$0xf0]  ;;  %v2106_v44 = vld [vmem:[#allocation2 + $0x8] sm:$0xf]  ;;  %v2287_v53 = vor.u32 %v3117_v38, %v2286_v36 }
  0x30   :  { %v3070_v47 = vld [vmem:[#allocation2 + $0x10] sm:$0xf0]  ;;  %v3071_v48 = vld [vmem:[#allocation5 + $0x4] sm:$0xf]  ;;  %v3568_v50 = vor.u32 %v3068_v39, %v2100_v40  ;;  %v3149_v52 = vld [vmem:[#allocation5 + $0x274] sm:$0xf]  ;;  %v2643_v56 = vor.u32 %v3203_v41, %v2640_v42 }
  0x31   :  { %987 = vmatpush.bf16.msra.mxu0 %v2135_v9  ;;  %1014 = vmatpush.bf16.msra.mxu2 %v2543_v11  ;;  %v2112_v49 = vld [vmem:[#allocation5 + $0x18] sm:$0xf0]  ;;  %v2478_v54 = vld [vmem:[#allocation5 + $0x2d8] sm:$0xf]  ;;  %v3165_v55 = vld [vmem:[#allocation5 + $0x2ec] sm:$0xf0]  ;;  %v3570_v62 = vor.u32 %v3070_v47, %v2106_v44 }
  0x32   :  { %1001 = vmatpush.bf16.msra.mxu1 %v2327_v14  ;;  %v2424_v57 = vld [vmem:[#allocation5 + $0x288] sm:$0xf0]  ;;  %v2262_v58 = vld [vmem:[#allocation5 + $0x128] sm:$0xf]  ;;  %v3111_v59 = vld [vmem:[#allocation5 + $0x13c] sm:$0xf0]  ;;  %v2115_v63 = vor.u32 %v3071_v48, %v2112_v49  ;;  %v2479_v0 = vor.u32 %v3165_v55, %v2478_v54 }
  0x33   :  { %1028 = vmatpush.bf16.msra.mxu3 %v2163_v23  ;;  %v3197_v60 = vld [vmem:[#allocation5 + $0x3f4] sm:$0xf]  ;;  %v2616_v61 = vld [vmem:[#allocation5 + $0x408] sm:$0xf0]  ;;  %v2427_v1 = vor.u32 %v3149_v52, %v2424_v57  ;;  %v3143_v2 = vld [vmem:[#allocation5 + $0x244] sm:$0xf]  ;;  %v2263_v3 = vor.u32 %v3111_v59, %v2262_v58 }
  0x34   :  { %v2454_v4 = vld [vmem:[#allocation5 + $0x2a8] sm:$0xf]  ;;  %v3159_v5 = vld [vmem:[#allocation5 + $0x2bc] sm:$0xf0]  ;;  %v2619_v6 = vor.u32 %v3197_v60, %v2616_v61  ;;  %v2400_v7 = vld [vmem:[#allocation5 + $0x258] sm:$0xf0] }
  0x35   :  { %988 = vmatpush.bf16.msra.mxu0 %v2111_v25  ;;  %1015 = vmatpush.bf16.msra.mxu2 %v2519_v26  ;;  %v2238_v8 = vld [vmem:[#allocation5 + $0xf8] sm:$0xf]  ;;  %v3105_v9 = vld [vmem:[#allocation5 + $0x10c] sm:$0xf0]  ;;  %v3191_v10 = vld [vmem:[#allocation5 + $0x3c4] sm:$0xf]  ;;  %v2455_v12 = vor.u32 %v3159_v5, %v2454_v4  ;;  %v2403_v13 = vor.u32 %v3143_v2, %v2400_v7 }
  0x36   :  { %1002 = vmatpush.bf16.msra.mxu1 %v2303_v32  ;;  %v2592_v11 = vld [vmem:[#allocation5 + $0x3d8] sm:$0xf0]  ;;  %v3137_v14 = vld [vmem:[#allocation5 + $0x214] sm:$0xf]  ;;  %v2239_v15 = vor.u32 %v3105_v9, %v2238_v8  ;;  %v2430_v16 = vld [vmem:[#allocation5 + $0x278] sm:$0xf] }
  0x37   :  { %1029 = vmatpush.bf16.msra.mxu3 %v2139_v43  ;;  %v3153_v17 = vld [vmem:[#allocation5 + $0x28c] sm:$0xf0]  ;;  %v2595_v18 = vor.u32 %v3191_v10, %v2592_v11  ;;  %v2376_v19 = vld [vmem:[#allocation5 + $0x228] sm:$0xf0]  ;;  %v2214_v20 = vld [vmem:[#allocation5 + $0xc8] sm:$0xf] }
  0x38   :  { %989 = vmatmul.bf16.vlgmr.msra.gmra.mxu0 %v3566_v45  ;;  %v3099_v21 = vld [vmem:[#allocation5 + $0xdc] sm:$0xf0]  ;;  %v3185_v22 = vld [vmem:[#allocation5 + $0x394] sm:$0xf]  ;;  %v2568_v23 = vld [vmem:[#allocation5 + $0x3a8] sm:$0xf0]  ;;  %v2431_v24 = vor.u32 %v3153_v17, %v2430_v16  ;;  %v2379_v25 = vor.u32 %v3137_v14, %v2376_v19 }
  0x39   :  { %1037 = vmatpush.bf16.msrb.mxu0 %v2475_v33  ;;  %1016 = vmatpush.bf16.msra.mxu2 %v2495_v46  ;;  %v3131_v26 = vld [vmem:[#allocation5 + $0x1e4] sm:$0xf]  ;;  %v2215_v27 = vor.u32 %v3099_v21, %v2214_v20  ;;  %v2406_v28 = vld [vmem:[#allocation5 + $0x248] sm:$0xf]  ;;  %v3147_v29 = vld [vmem:[#allocation5 + $0x25c] sm:$0xf0]  ;;  %v2571_v30 = vor.u32 %v3185_v22, %v2568_v23 }
  0x3a   :  { %1051 = vmatpush.bf16.msrb.mxu1 %v2667_v37  ;;  %v2352_v31 = vld [vmem:[#allocation5 + $0x1f8] sm:$0xf0]  ;;  %v2190_v32 = vld [vmem:[#allocation5 + $0x98] sm:$0xf]  ;;  %v3093_v33 = vld [vmem:[#allocation5 + $0xac] sm:$0xf0]  ;;  %v2407_v36 = vor.u32 %v3147_v29, %v2406_v28 }
  0x3b   :  { %1003 = vmatmul.bf16.vlgmr.msra.gmra.mxu1 %v3568_v50  ;;  %1030 = vmatpush.bf16.msra.mxu3 %v2115_v63  ;;  %v3179_v34 = vld [vmem:[#allocation5 + $0x364] sm:$0xf]  ;;  %v2544_v35 = vld [vmem:[#allocation5 + $0x378] sm:$0xf0]  ;;  %v2355_v37 = vor.u32 %v3131_v26, %v2352_v31  ;;  %v3125_v38 = vld [vmem:[#allocation5 + $0x1b4] sm:$0xf]  ;;  %v2191_v39 = vor.u32 %v3093_v33, %v2190_v32 }
  0x3c   :  { %1017 = vmatmul.bf16.vlgmr.msra.gmra.mxu2 %v3570_v62  ;;  %v2382_v40 = vld [vmem:[#allocation5 + $0x218] sm:$0xf]  ;;  %v3141_v41 = vld [vmem:[#allocation5 + $0x22c] sm:$0xf0]  ;;  %v2547_v42 = vor.u32 %v3179_v34, %v2544_v35  ;;  %v2328_v43 = vld [vmem:[#allocation5 + $0x1c8] sm:$0xf0] }
  0x3d   :  { %1038 = vmatpush.bf16.msrb.mxu0 %v2451_v51  ;;  %1065 = vmatpush.bf16.msrb.mxu2 %v2287_v53  ;;  %v2166_v44 = vld [vmem:[#allocation5 + $0x68] sm:$0xf]  ;;  %v3087_v46 = vld [vmem:[#allocation5 + $0x7c] sm:$0xf0]  ;;  %v3173_v47 = vld [vmem:[#allocation5 + $0x334] sm:$0xf]  ;;  %v2383_v51 = vor.u32 %v3141_v41, %v2382_v40  ;;  %v2331_v52 = vor.u32 %v3125_v38, %v2328_v43 }
  0x3e   :  { %1052 = vmatpush.bf16.msrb.mxu1 %v2643_v56  ;;  %1031 = vmatmul.bf16.vlgmr.msra.gmra.mxu3 %v3566_v45  ;;  %v2520_v48 = vld [vmem:[#allocation5 + $0x348] sm:$0xf0]  ;;  %v3119_v49 = vld [vmem:[#allocation5 + $0x184] sm:$0xf]  ;;  %v2304_v53 = vld [vmem:[#allocation5 + $0x198] sm:$0xf0]  ;;  %v2167_v54 = vor.u32 %v3087_v46, %v2166_v44 }
  0x3f   :  { %1079 = vmatpush.bf16.msrb.mxu3 %v2479_v0  ;;  %v2358_v55 = vld [vmem:[#allocation5 + $0x1e8] sm:$0xf]  ;;  %v3135_v56 = vld [vmem:[#allocation5 + $0x1fc] sm:$0xf0]  ;;  %v2523_v57 = vor.u32 %v3173_v47, %v2520_v48  ;;  %v3167_v58 = vld [vmem:[#allocation5 + $0x304] sm:$0xf]  ;;  %v2307_v4 = vor.u32 %v3119_v49, %v2304_v53 }
  0x40   :  { %v2142_v59 = vld [vmem:[#allocation5 + $0x38] sm:$0xf]  ;;  %v3081_v60 = vld [vmem:[#allocation5 + $0x4c] sm:$0xf0]  ;;  %v2496_v61 = vld [vmem:[#allocation5 + $0x318] sm:$0xf0] }
  0x41   :  { %1039 = vmatpush.bf16.msrb.mxu0 %v2427_v1  ;;  %1066 = vmatpush.bf16.msrb.mxu2 %v2263_v3  ;;  %v2670_v63 = vld [vmem:[#allocation5 + $0x458] sm:$0xf]  ;;  %v3213_v0 = vld [vmem:[#allocation5 + $0x46c] sm:$0xf0]  ;;  %v3114_v1 = vld [vmem:[#allocation5 + $0x15c] sm:$0xf]  ;;  %v2359_v3 = vor.u32 %v3135_v56, %v2358_v55  ;;  %v2143_v5 = vor.u32 %v3081_v60, %v2142_v59  ;;  %v2499_v8 = vor.u32 %v3167_v58, %v2496_v61 }
  0x42   :  { %1053 = vmatpush.bf16.msrb.mxu1 %v2619_v6  ;;  %v2288_v2 = vld [vmem:[#allocation5 + $0x170] sm:$0xf0]  ;;  %v2334_v6 = vld [vmem:[#allocation5 + $0x1b8] sm:$0xf]  ;;  %v3129_v7 = vld [vmem:[#allocation5 + $0x1cc] sm:$0xf0]  ;;  %v2671_v9 = vor.u32 %v3213_v0, %v2670_v63 }
  0x43   :  { %1080 = vmatpush.bf16.msrb.mxu3 %v2455_v12  ;;  %v2646_v10 = vld [vmem:[#allocation5 + $0x428] sm:$0xf]  ;;  %v3075_v12 = vld [vmem:[#allocation5 + $0x1c] sm:$0xf0]  ;;  %v2480_v16 = vld [vmem:[#allocation5 + $0x2f0] sm:$0xf0]  ;;  %v2335_v19 = vor.u32 %v3129_v7, %v2334_v6 }
  0x44   :  { %v2118_v11 = vld [vmem:[#allocation5 + $0x8] sm:$0xf]  ;;  %v3207_v14 = vld [vmem:[#allocation5 + $0x43c] sm:$0xf0]  ;;  %v3108_v17 = vld [vmem:[#allocation5 + $0x12c] sm:$0xf] }
  0x45   :  { %1040 = vmatpush.bf16.msrb.mxu0 %v2403_v13  ;;  %1067 = vmatpush.bf16.msrb.mxu2 %v2239_v15  ;;  %v2291_v13 = vor.u32 %v3114_v1, %v2288_v2  ;;  %v3162_v15 = vld [vmem:[#allocation5 + $0x2dc] sm:$0xf]  ;;  %v2119_v20 = vor.u32 %v3075_v12, %v2118_v11  ;;  %v2310_v21 = vld [vmem:[#allocation5 + $0x188] sm:$0xf]  ;;  %v3123_v22 = vld [vmem:[#allocation5 + $0x19c] sm:$0xf0]  ;;  %v2647_v23 = vor.u32 %v3207_v14, %v2646_v10 }
  0x46   :  { %1054 = vmatpush.bf16.msrb.mxu1 %v2595_v18  ;;  %v2264_v18 = vld [vmem:[#allocation5 + $0x140] sm:$0xf0]  ;;  %v3156_v28 = vld [vmem:[#allocation5 + $0x2ac] sm:$0xf]  ;;  %v2240_v31 = vld [vmem:[#allocation5 + $0x110] sm:$0xf0]  ;;  %v2311_v32 = vor.u32 %v3123_v22, %v2310_v21 }
  0x47   :  { %1081 = vmatpush.bf16.msrb.mxu3 %v2431_v24  ;;  %v2622_v24 = vld [vmem:[#allocation5 + $0x3f8] sm:$0xf]  ;;  %v2267_v26 = vor.u32 %v3108_v17, %v2264_v18  ;;  %v2456_v29 = vld [vmem:[#allocation5 + $0x2c0] sm:$0xf0]  ;;  %v2598_v34 = vld [vmem:[#allocation5 + $0x3c8] sm:$0xf] }
  0x48   :  { %v3195_v35 = vld [vmem:[#allocation5 + $0x3dc] sm:$0xf0]  ;;  %v3096_v38 = vld [vmem:[#allocation5 + $0xcc] sm:$0xf]  ;;  %v2432_v40 = vld [vmem:[#allocation5 + $0x290] sm:$0xf0] }
  0x49   :  { %1041 = vmatpush.bf16.msrb.mxu0 %v2379_v25  ;;  %1068 = vmatpush.bf16.msrb.mxu2 %v2215_v27  ;;  %v2483_v25 = vor.u32 %v3162_v15, %v2480_v16  ;;  %v3201_v27 = vld [vmem:[#allocation5 + $0x40c] sm:$0xf0]  ;;  %v2216_v41 = vld [vmem:[#allocation5 + $0xe0] sm:$0xf0]  ;;  %v2672_v43 = vld [vmem:[#allocation5 + $0x470] sm:$0xf0]  ;;  %v2599_v46 = vor.u32 %v3195_v35, %v2598_v34 }
  0x4a   :  { %1055 = vmatpush.bf16.msrb.mxu1 %v2571_v30  ;;  %v3102_v30 = vld [vmem:[#allocation5 + $0xfc] sm:$0xf]  ;;  %v2623_v33 = vor.u32 %v3201_v27, %v2622_v24  ;;  %v2574_v47 = vld [vmem:[#allocation5 + $0x398] sm:$0xf]  ;;  %v3189_v48 = vld [vmem:[#allocation5 + $0x3ac] sm:$0xf0] }
  0x4b   :  { %1082 = vmatpush.bf16.msrb.mxu3 %v2407_v36  ;;  %v2459_v36 = vor.u32 %v3156_v28, %v2456_v29  ;;  %v3144_v53 = vld [vmem:[#allocation5 + $0x24c] sm:$0xf]  ;;  %v2192_v55 = vld [vmem:[#allocation5 + $0xb0] sm:$0xf0]  ;;  %v2575_v59 = vor.u32 %v3189_v48, %v2574_v47  ;;  %v2550_v60 = vld [vmem:[#allocation5 + $0x368] sm:$0xf] }
  0x4c   :  { %v3204_v56 = vld [vmem:[#allocation5 + $0x42c] sm:$0xf]  ;;  %v3183_v61 = vld [vmem:[#allocation5 + $0x37c] sm:$0xf0]  ;;  %v3138_v2 = vld [vmem:[#allocation5 + $0x21c] sm:$0xf] }
  0x4d   :  { %1042 = vmatpush.bf16.msrb.mxu0 %v2355_v37  ;;  %1069 = vmatpush.bf16.msrb.mxu2 %v2191_v39  ;;  %v2243_v37 = vor.u32 %v3102_v30, %v2240_v31  ;;  %v3150_v39 = vld [vmem:[#allocation5 + $0x27c] sm:$0xf]  ;;  %v3084_v1 = vld [vmem:[#allocation5 + $0x6c] sm:$0xf]  ;;  %v2624_v6 = vld [vmem:[#allocation5 + $0x410] sm:$0xf0] }
  0x4e   :  { %1056 = vmatpush.bf16.msrb.mxu1 %v2547_v42  ;;  %v3210_v42 = vld [vmem:[#allocation5 + $0x45c] sm:$0xf]  ;;  %v2435_v49 = vor.u32 %v3150_v39, %v2432_v40  ;;  %v3177_v10 = vld [vmem:[#allocation5 + $0x34c] sm:$0xf0]  ;;  %v3132_v14 = vld [vmem:[#allocation5 + $0x1ec] sm:$0xf] }
  0x4f   :  { %1083 = vmatpush.bf16.msrb.mxu3 %v2383_v51  ;;  %v2675_v44 = vor.u32 %v3210_v42, %v2672_v43  ;;  %v2219_v51 = vor.u32 %v3096_v38, %v2216_v41  ;;  %v2360_v15 = vld [vmem:[#allocation5 + $0x200] sm:$0xf0]  ;;  %v2144_v16 = vld [vmem:[#allocation5 + $0x50] sm:$0xf0]  ;;  %v3192_v17 = vld [vmem:[#allocation5 + $0x3cc] sm:$0xf] }
  0x50   :  { %v2600_v18 = vld [vmem:[#allocation5 + $0x3e0] sm:$0xf0]  ;;  %v3171_v22 = vld [vmem:[#allocation5 + $0x31c] sm:$0xf0]  ;;  %v3126_v27 = vld [vmem:[#allocation5 + $0x1bc] sm:$0xf] }
  0x51   :  { %1043 = vmatpush.bf16.msrb.mxu0 %v2331_v52  ;;  %1070 = vmatpush.bf16.msrb.mxu2 %v2167_v54  ;;  %v3090_v52 = vld [vmem:[#allocation5 + $0x9c] sm:$0xf]  ;;  %v2408_v54 = vld [vmem:[#allocation5 + $0x260] sm:$0xf0]  ;;  %v2336_v28 = vld [vmem:[#allocation5 + $0x1d0] sm:$0xf0] }
  0x52   :  { %1057 = vmatpush.bf16.msrb.mxu1 %v2523_v57  ;;  %v2648_v57 = vld [vmem:[#allocation5 + $0x440] sm:$0xf0]  ;;  %v2411_v63 = vor.u32 %v3144_v53, %v2408_v54  ;;  %v2195_v0 = vor.u32 %v3090_v52, %v2192_v55  ;;  %v2294_v29 = vld [vmem:[#allocation5 + $0x160] sm:$0xf]  ;;  %v3118_v30 = vld [vmem:[#allocation5 + $0x174] sm:$0xf0] }
  0x53   :  { %1084 = vmatpush.bf16.msrb.mxu3 %v2359_v3  ;;  %v2651_v58 = vor.u32 %v3204_v56, %v2648_v57  ;;  %v2384_v3 = vld [vmem:[#allocation5 + $0x230] sm:$0xf0]  ;;  %v2120_v24 = vld [vmem:[#allocation5 + $0x20] sm:$0xf0]  ;;  %v3186_v31 = vld [vmem:[#allocation5 + $0x39c] sm:$0xf]  ;;  %v2295_v43 = vor.u32 %v3118_v30, %v2294_v29 }
  0x54   :  { %v2387_v11 = vor.u32 %v3138_v2, %v2384_v3  ;;  %v3166_v34 = vld [vmem:[#allocation5 + $0x2f4] sm:$0xf0]  ;;  %v3120_v38 = vld [vmem:[#allocation5 + $0x18c] sm:$0xf]  ;;  %v2312_v39 = vld [vmem:[#allocation5 + $0x1a0] sm:$0xf0] }
  0x55   :  { %1044 = vmatpush.bf16.msrb.mxu0 %v2307_v4  ;;  %1071 = vmatpush.bf16.msrb.mxu2 %v2143_v5  ;;  %v2168_v4 = vld [vmem:[#allocation5 + $0x80] sm:$0xf0]  ;;  %v3198_v5 = vld [vmem:[#allocation5 + $0x3fc] sm:$0xf]  ;;  %v2678_v41 = vld [vmem:[#allocation5 + $0x460] sm:$0xf]  ;;  %v2315_v54 = vor.u32 %v3120_v38, %v2312_v39 }
  0x56   :  { %1058 = vmatpush.bf16.msrb.mxu1 %v2499_v8  ;;  %v2627_v7 = vor.u32 %v3198_v5, %v2624_v6  ;;  %v2551_v8 = vor.u32 %v3183_v61, %v2550_v60  ;;  %v2171_v12 = vor.u32 %v3084_v1, %v2168_v4  ;;  %v3214_v42 = vld [vmem:[#allocation5 + $0x474] sm:$0xf0]  ;;  %v3112_v47 = vld [vmem:[#allocation5 + $0x144] sm:$0xf0]  ;;  %v3180_v48 = vld [vmem:[#allocation5 + $0x36c] sm:$0xf] }
  0x57   :  { %1085 = vmatpush.bf16.msrb.mxu3 %v2335_v19  ;;  %v2502_v19 = vld [vmem:[#allocation5 + $0x308] sm:$0xf]  ;;  %v2679_v55 = vor.u32 %v3214_v42, %v2678_v41  ;;  %v2654_v56 = vld [vmem:[#allocation5 + $0x430] sm:$0xf]  ;;  %v3106_v61 = vld [vmem:[#allocation5 + $0x114] sm:$0xf0] }
  0x58   :  { %1045 = vmatmul.bf16.vlgmr.msrb.gmra.mxu0 %v3568_v50  ;;  %v3160_v52 = vld [vmem:[#allocation5 + $0x2c4] sm:$0xf0]  ;;  %v2438_v1 = vld [vmem:[#allocation5 + $0x280] sm:$0xf]  ;;  %v3154_v2 = vld [vmem:[#allocation5 + $0x294] sm:$0xf0] }
  0x59   :  { %1093 = vmatpush.bf16.msra.mxu0 %v2671_v9  ;;  %1059 = vmatmul.bf16.vlgmr.msrb.gmra.mxu1 %v3570_v62  ;;  %v2526_v9 = vld [vmem:[#allocation5 + $0x338] sm:$0xf]  ;;  %v3208_v57 = vld [vmem:[#allocation5 + $0x444] sm:$0xf0]  ;;  %v2414_v4 = vld [vmem:[#allocation5 + $0x250] sm:$0xf] }
  0x5a   :  { %1107 = vmatpush.bf16.msra.mxu1 %v2291_v13  ;;  %1072 = vmatpush.bf16.msrb.mxu2 %v2119_v20  ;;  %v3078_v13 = vld [vmem:[#allocation5 + $0x3c] sm:$0xf]  ;;  %v2603_v20 = vor.u32 %v3192_v17, %v2600_v18  ;;  %v2527_v21 = vor.u32 %v3177_v10, %v2526_v9  ;;  %v2655_v5 = vor.u32 %v3208_v57, %v2654_v56  ;;  %v2630_v6 = vld [vmem:[#allocation5 + $0x400] sm:$0xf]  ;;  %v2222_v9 = vld [vmem:[#allocation5 + $0xd0] sm:$0xf] }
  0x5b   :  { %1086 = vmatpush.bf16.msrb.mxu3 %v2311_v32  ;;  %v2576_v32 = vld [vmem:[#allocation5 + $0x3b0] sm:$0xf0]  ;;  %v2439_v10 = vor.u32 %v3154_v2, %v2438_v1  ;;  %v2296_v17 = vld [vmem:[#allocation5 + $0x178] sm:$0xf0]  ;;  %v2272_v29 = vld [vmem:[#allocation5 + $0x148] sm:$0xf0] }
  0x5c   :  { %v2579_v35 = vor.u32 %v3186_v31, %v2576_v32  ;;  %v2366_v31 = vld [vmem:[#allocation5 + $0x1f0] sm:$0xf]  ;;  %v3088_v38 = vld [vmem:[#allocation5 + $0x84] sm:$0xf0]  ;;  %v2248_v41 = vld [vmem:[#allocation5 + $0x118] sm:$0xf0] }
  0x5d   :  { %1094 = vmatpush.bf16.msra.mxu0 %v2647_v23  ;;  %1073 = vmatmul.bf16.vlgmr.msrb.gmra.mxu2 %v3566_v45  ;;  %v3072_v23 = vld [vmem:[#allocation5 + $0xc] sm:$0xf]  ;;  %v3136_v39 = vld [vmem:[#allocation5 + $0x204] sm:$0xf0]  ;;  %v2318_v57 = vld [vmem:[#allocation5 + $0x190] sm:$0xf] }
  0x5e   :  { %1121 = vmatpush.bf16.msra.mxu2 %v2483_v25  ;;  %1108 = vmatpush.bf16.msra.mxu1 %v2267_v26  ;;  %v2363_v25 = vor.u32 %v3132_v14, %v2360_v15  ;;  %v2147_v26 = vor.u32 %v3078_v13, %v2144_v16  ;;  %v2123_v40 = vor.u32 %v3072_v23, %v2120_v24  ;;  %v2504_v13 = vld [vmem:[#allocation5 + $0x320] sm:$0xf0]  ;;  %v3148_v14 = vld [vmem:[#allocation5 + $0x264] sm:$0xf0]  ;;  %v2126_v1 = vld [vmem:[#allocation5 + $0x10] sm:$0xf] }
  0x5f   :  { %1087 = vmatmul.bf16.vlgmr.msrb.gmra.mxu3 %v3568_v50  ;;  %v3115_v16 = vld [vmem:[#allocation5 + $0x164] sm:$0xf]  ;;  %v2415_v23 = vor.u32 %v3148_v14, %v2414_v4  ;;  %v3196_v24 = vld [vmem:[#allocation5 + $0x3e4] sm:$0xf0]  ;;  %v2200_v4 = vld [vmem:[#allocation5 + $0xb8] sm:$0xf0] }
  0x60   :  { %1135 = vmatpush.bf16.msra.mxu3 %v2675_v44  ;;  %v2270_v44 = vld [vmem:[#allocation5 + $0x130] sm:$0xf]  ;;  %v2299_v18 = vor.u32 %v3115_v16, %v2296_v17  ;;  %v3076_v2 = vld [vmem:[#allocation5 + $0x24] sm:$0xf0]  ;;  %v3245_v16 = vld [vmem:[#allocation8 + $0xec] sm:$0xf0] }
  0x61   :  { %1095 = vmatpush.bf16.msra.mxu0 %v2623_v33  ;;  %v2486_v33 = vld [vmem:[#allocation5 + $0x2e0] sm:$0xf]  ;;  %v3172_v14 = vld [vmem:[#allocation5 + $0x324] sm:$0xf0]  ;;  %s3513_s2 = smov [#allocation11]   ;;  %s2061_s23 = sshll.u32 %s3630_s5, 4  ;;  %s2062_s23 = int_to_ptr.hbm [resolvable:$true] %s2061_s23 }
  0x62   :  { %1122 = vmatpush.bf16.msra.mxu2 %v2459_v36  ;;  %1109 = vmatpush.bf16.msra.mxu1 %v2243_v37  ;;  %v2503_v36 = vor.u32 %v3171_v22, %v2502_v19  ;;  %v2339_v37 = vor.u32 %v3126_v27, %v2336_v28  ;;  %v2390_v19 = vld [vmem:[#allocation5 + $0x220] sm:$0xf]  ;;  %v3142_v27 = vld [vmem:[#allocation5 + $0x234] sm:$0xf0]  ;;  %v3109_v28 = vld [vmem:[#allocation5 + $0x134] sm:$0xf] }
  0x63   :  { %v2275_v30 = vor.u32 %v3109_v28, %v2272_v29  ;;  %v2782_v28 = vld [vmem:[#allocation8 + $0xc0] sm:$0xf]  ;;  %v3241_v29 = vld [vmem:[#allocation8 + $0xcc] sm:$0xf0]  ;;  %s2059_s3 = sshll.u32 %s3513_s2, 4  ;;  %s2048_s26 = sshll.u32 %s3629_s4, 4  ;;  %s2060_s3 = int_to_ptr.vmem [resolvable:$true] %s2059_s3  ;;  %s2049_s26 = int_to_ptr.hbm [resolvable:$true] %s2048_s26 }
  0x64   :  { %1136 = vmatpush.bf16.msra.mxu3 %v2651_v58  ;;  %v2271_v58 = vor.u32 %v3112_v47, %v2270_v44  ;;  %s3514_s27 = smov [#allocation10]   ;;  %s3515_s29 = smov [#allocation13]   ;;  %vm2040_vm0 = vcmask 122880  }
  0x65   :  { %1096 = vmatpush.bf16.msra.mxu0 %v2599_v46  ;;  %v2487_v46 = vor.u32 %v3166_v34, %v2486_v33  ;;  %v2582_v33 = vld [vmem:[#allocation5 + $0x3a0] sm:$0xf]  ;;  %s2046_s28 = sshll.u32 %s3514_s27, 4  ;;  %s2073_s5 = sshll.u32 %s3515_s29, 4  ;;  %s2047_s28 = int_to_ptr.vmem [resolvable:$true] %s2046_s28  ;;  %s2074_s5 = int_to_ptr.vmem [resolvable:$true] %s2073_s5 }
  0x66   :  { %1123 = vmatpush.bf16.msra.mxu2 %v2435_v49  ;;  %1110 = vmatpush.bf16.msra.mxu1 %v2219_v51  ;;  %v2552_v49 = vld [vmem:[#allocation5 + $0x380] sm:$0xf0]  ;;  %v2462_v51 = vld [vmem:[#allocation5 + $0x2b0] sm:$0xf]  ;;  %s2075_s8 = sshll.u32 %s3631_s6, 4  ;;  %s2076_s8 = int_to_ptr.hbm [resolvable:$true] %s2075_s8 }
  0x67   :  { %v2555_v53 = vor.u32 %v3180_v48, %v2552_v49  ;;  %v2463_v60 = vor.u32 %v3160_v52, %v2462_v51  ;;  %v2367_v48 = vor.u32 %v3136_v39, %v2366_v31  ;;  %v3184_v49 = vld [vmem:[#allocation5 + $0x384] sm:$0xf0]  ;;  %v2150_v51 = vld [vmem:[#allocation5 + $0x40] sm:$0xf]  ;;  %v3082_v52 = vld [vmem:[#allocation5 + $0x54] sm:$0xf0]  ;;  %v2783_v39 = vor.u32 %v3241_v29, %v2782_v28 }
  0x68   :  { %1137 = vmatpush.bf16.msra.mxu3 %v2627_v7  ;;  %v3202_v7 = vld [vmem:[#allocation5 + $0x414] sm:$0xf0]  ;;  %v2512_v28 = vld [vmem:[#allocation5 + $0x328] sm:$0xf0] }
  0x69   :  { %1097 = vmatpush.bf16.msra.mxu0 %v2575_v59  ;;  %v2246_v59 = vld [vmem:[#allocation5 + $0x100] sm:$0xf] }
  0x6a   :  { %1124 = vmatpush.bf16.msra.mxu2 %v2411_v63  ;;  %1111 = vmatpush.bf16.msra.mxu1 %v2195_v0  ;;  %v3174_v63 = vld [vmem:[#allocation5 + $0x33c] sm:$0xf]  ;;  %v2528_v0 = vld [vmem:[#allocation5 + $0x350] sm:$0xf0] }
  0x6b   :  { %v2531_v3 = vor.u32 %v3174_v63, %v2528_v0  ;;  %v3178_v0 = vld [vmem:[#allocation5 + $0x354] sm:$0xf0] }
  0x6c   :  { %1138 = vmatpush.bf16.msra.mxu3 %v2603_v20  ;;  %v2631_v20 = vor.u32 %v3202_v7, %v2630_v6  ;;  %v3211_v6 = vld [vmem:[#allocation5 + $0x464] sm:$0xf]  ;;  %v2680_v7 = vld [vmem:[#allocation5 + $0x478] sm:$0xf0] }
  0x6d   :  { %1098 = vmatpush.bf16.msra.mxu0 %v2551_v8  ;;  %v2247_v8 = vor.u32 %v3106_v61, %v2246_v59  ;;  %v2151_v61 = vor.u32 %v3082_v52, %v2150_v51  ;;  %v2416_v52 = vld [vmem:[#allocation5 + $0x268] sm:$0xf0] }
  0x6e   :  { %1125 = vmatpush.bf16.msra.mxu2 %v2387_v11  ;;  %1112 = vmatpush.bf16.msra.mxu1 %v2171_v12  ;;  %v3100_v11 = vld [vmem:[#allocation5 + $0xe4] sm:$0xf0]  ;;  %v3168_v12 = vld [vmem:[#allocation5 + $0x30c] sm:$0xf] }
  0x6f   :  { %v2507_v15 = vor.u32 %v3168_v12, %v2504_v13  ;;  %v2223_v22 = vor.u32 %v3100_v11, %v2222_v9  ;;  %v2488_v9 = vld [vmem:[#allocation5 + $0x2f8] sm:$0xf0]  ;;  %v2510_v11 = vld [vmem:[#allocation5 + $0x310] sm:$0xf]  ;;  %v2127_v12 = vor.u32 %v3076_v2, %v2126_v1  ;;  %v2910_v2 = vld [vmem:[#allocation8 + $0x1c0] sm:$0xf] }
  0x70   :  { %1139 = vmatpush.bf16.msra.mxu3 %v2579_v35  ;;  %v2391_v35 = vor.u32 %v3142_v27, %v2390_v19  ;;  %v3085_v19 = vld [vmem:[#allocation5 + $0x74] sm:$0xf]  ;;  %v2584_v1 = vld [vmem:[#allocation5 + $0x3b8] sm:$0xf0] }
  0x71   :  { %1099 = vmatpush.bf16.msra.mxu0 %v2527_v21  ;;  %v2606_v21 = vld [vmem:[#allocation5 + $0x3d0] sm:$0xf] }
  0x72   :  { %1126 = vmatpush.bf16.msra.mxu2 %v2363_v25  ;;  %1113 = vmatpush.bf16.msra.mxu1 %v2147_v26  ;;  %v2198_v25 = vld [vmem:[#allocation5 + $0xa0] sm:$0xf]  ;;  %v3094_v26 = vld [vmem:[#allocation5 + $0xb4] sm:$0xf0]  ;;  %v2607_v32 = vor.u32 %v3196_v24, %v2606_v21  ;;  %v3157_v21 = vld [vmem:[#allocation5 + $0x2b4] sm:$0xf] }
  0x73   :  { %v2199_v34 = vor.u32 %v3094_v26, %v2198_v25  ;;  %v2464_v25 = vld [vmem:[#allocation5 + $0x2c8] sm:$0xf0]  ;;  %v2511_v26 = vor.u32 %v3172_v14, %v2510_v11  ;;  %v2894_v14 = vld [vmem:[#allocation8 + $0x1a0] sm:$0xf] }
  0x74   :  { %1140 = vmatpush.bf16.msra.mxu3 %v2555_v53  ;;  %v3130_v53 = vld [vmem:[#allocation5 + $0x1d4] sm:$0xf0]  ;;  %v2368_v11 = vld [vmem:[#allocation5 + $0x208] sm:$0xf0] }
  0x75   :  { %1100 = vmatpush.bf16.msra.mxu0 %v2503_v36  ;;  %v3190_v36 = vld [vmem:[#allocation5 + $0x3b4] sm:$0xf0] }
  0x76   :  { %1127 = vmatpush.bf16.msra.mxu2 %v2339_v37  ;;  %1114 = vmatpush.bf16.msra.mxu1 %v2123_v40  ;;  %v2174_v37 = vld [vmem:[#allocation5 + $0x70] sm:$0xf]  ;;  %v3103_v40 = vld [vmem:[#allocation5 + $0x104] sm:$0xf]  ;;  %v2583_v44 = vor.u32 %v3190_v36, %v2582_v33  ;;  %v2152_v33 = vld [vmem:[#allocation5 + $0x58] sm:$0xf0] }
  0x77   :  { %v2251_v42 = vor.u32 %v3103_v40, %v2248_v41  ;;  %v2175_v47 = vor.u32 %v3088_v38, %v2174_v37  ;;  %v2632_v36 = vld [vmem:[#allocation5 + $0x418] sm:$0xf0]  ;;  %v2766_v40 = vld [vmem:[#allocation8 + $0xa0] sm:$0xf]  ;;  %v3237_v41 = vld [vmem:[#allocation8 + $0xac] sm:$0xf0] }
  0x78   :  { %1101 = vmatmul.bf16.vlgmr.msra.gmra.mxu0 %v3570_v62  ;;  %1141 = vmatpush.bf16.msra.mxu3 %v2531_v3  ;;  %v3091_v3 = vld [vmem:[#allocation5 + $0xa4] sm:$0xf]  ;;  %v2440_v38 = vld [vmem:[#allocation5 + $0x298] sm:$0xf0] }
  0x79   :  { %1149 = vmatpush.bf16.msrb.mxu0 %v2295_v43  ;;  %1115 = vmatmul.bf16.vlgmr.msra.gmra.mxu1 %v3566_v45  ;;  %v2342_v43 = vld [vmem:[#allocation5 + $0x1c0] sm:$0xf] }
  0x7a   :  { %1163 = vmatpush.bf16.msrb.mxu1 %v2487_v46  ;;  %1128 = vmatpush.bf16.msra.mxu2 %v2315_v54  ;;  %v2558_v46 = vld [vmem:[#allocation5 + $0x370] sm:$0xf]  ;;  %v3097_v54 = vld [vmem:[#allocation5 + $0xd4] sm:$0xf]  ;;  %v2343_v63 = vor.u32 %v3130_v53, %v2342_v43  ;;  %v2926_v53 = vld [vmem:[#allocation8 + $0x1e0] sm:$0xf] }
  0x7b   :  { %v2559_v59 = vor.u32 %v3184_v49, %v2558_v46  ;;  %v2128_v46 = vld [vmem:[#allocation5 + $0x28] sm:$0xf0] }
  0x7c   :  { %1142 = vmatpush.bf16.msra.mxu3 %v2507_v15  ;;  %v2798_v15 = vld [vmem:[#allocation8 + $0xe0] sm:$0xf]  ;;  %v2608_v49 = vld [vmem:[#allocation5 + $0x3e8] sm:$0xf0] }
  0x7d   :  { %1150 = vmatpush.bf16.msrb.mxu0 %v2271_v58  ;;  %1129 = vmatmul.bf16.vlgmr.msra.gmra.mxu2 %v3568_v50  ;;  %v3124_v58 = vld [vmem:[#allocation5 + $0x1a4] sm:$0xf0]  ;;  %v2799_v27 = vor.u32 %v3245_v16, %v2798_v15  ;;  %v3269_v15 = vld [vmem:[#allocation8 + $0x1ac] sm:$0xf0] }
  0x7e   :  { %1177 = vmatpush.bf16.msrb.mxu2 %v2679_v55  ;;  %1164 = vmatpush.bf16.msrb.mxu1 %v2463_v60  ;;  %v2224_v55 = vld [vmem:[#allocation5 + $0xe8] sm:$0xf0]  ;;  %v2534_v60 = vld [vmem:[#allocation5 + $0x340] sm:$0xf]  ;;  %v2319_v13 = vor.u32 %v3124_v58, %v2318_v57 }
  0x7f   :  { %1143 = vmatmul.bf16.vlgmr.msra.gmra.mxu3 %v3570_v62  ;;  %v2227_v56 = vor.u32 %v3097_v54, %v2224_v55  ;;  %v3277_v54 = vld [vmem:[#allocation8 + $0x1ec] sm:$0xf0]  ;;  %v2767_v55 = vor.u32 %v3237_v41, %v2766_v40  ;;  %v3243_v40 = vld [vmem:[#allocation8 + $0xe4] sm:$0xf]  ;;  %v2800_v41 = vld [vmem:[#allocation8 + $0xf0] sm:$0xf0] }
  0x80   :  { %1191 = vmatpush.bf16.msrb.mxu3 %v2299_v18  ;;  %v2683_v18 = vor.u32 %v3211_v6, %v2680_v7  ;;  %v2927_v58 = vor.u32 %v3277_v54, %v2926_v53  ;;  %v2803_v54 = vor.u32 %v3243_v40, %v2800_v41 }
  0x81   :  { %1151 = vmatpush.bf16.msrb.mxu0 %v2247_v8  ;;  %v2203_v8 = vor.u32 %v3091_v3, %v2200_v4  ;;  %v3273_v3 = vld [vmem:[#allocation8 + $0x1cc] sm:$0xf0] }
  0x82   :  { %1178 = vmatpush.bf16.msrb.mxu2 %v2655_v5  ;;  %1165 = vmatpush.bf16.msrb.mxu1 %v2439_v10  ;;  %v3163_v5 = vld [vmem:[#allocation5 + $0x2e4] sm:$0xf]  ;;  %v2535_v10 = vor.u32 %v3178_v0, %v2534_v60  ;;  %v3233_v60 = vld [vmem:[#allocation8 + $0x8c] sm:$0xf0]  ;;  %v2911_v7 = vor.u32 %v3273_v3, %v2910_v2  ;;  %v2912_v2 = vld [vmem:[#allocation8 + $0x1d0] sm:$0xf0] }
  0x83   :  { %v2491_v17 = vor.u32 %v3163_v5, %v2488_v9  ;;  %v3187_v0 = vld [vmem:[#allocation5 + $0x3a4] sm:$0xf]  ;;  %v3229_v9 = vld [vmem:[#allocation8 + $0x6c] sm:$0xf0] }
  0x84   :  { %1192 = vmatpush.bf16.msrb.mxu3 %v2275_v30  ;;  %v2467_v30 = vor.u32 %v3157_v21, %v2464_v25  ;;  %v2734_v5 = vld [vmem:[#allocation8 + $0x60] sm:$0xf]  ;;  %v3225_v21 = vld [vmem:[#allocation8 + $0x4c] sm:$0xf0]  ;;  %v2536_v25 = vld [vmem:[#allocation5 + $0x358] sm:$0xf0] }
  0x85   :  { %1152 = vmatpush.bf16.msrb.mxu0 %v2223_v22  ;;  %v3205_v22 = vld [vmem:[#allocation5 + $0x434] sm:$0xf]  ;;  %v2735_v16 = vor.u32 %v3229_v9, %v2734_v5  ;;  %v2830_v5 = vld [vmem:[#allocation8 + $0x120] sm:$0xf]  ;;  %v2768_v9 = vld [vmem:[#allocation8 + $0xb0] sm:$0xf0] }
  0x86   :  { %1179 = vmatpush.bf16.msrb.mxu2 %v2631_v20  ;;  %1166 = vmatpush.bf16.msrb.mxu1 %v2415_v23  ;;  %v2176_v20 = vld [vmem:[#allocation5 + $0x88] sm:$0xf0] }
  0x87   :  { %v2656_v23 = vld [vmem:[#allocation5 + $0x448] sm:$0xf0]  ;;  %v2179_v24 = vor.u32 %v3085_v19, %v2176_v20  ;;  %v2895_v19 = vor.u32 %v3269_v15, %v2894_v14  ;;  %v2896_v14 = vld [vmem:[#allocation8 + $0x1b0] sm:$0xf0] }
  0x88   :  { %1193 = vmatpush.bf16.msrb.mxu3 %v2251_v42  ;;  %v2659_v31 = vor.u32 %v3205_v22, %v2656_v23  ;;  %v3127_v22 = vld [vmem:[#allocation5 + $0x1c4] sm:$0xf]  ;;  %v2344_v23 = vld [vmem:[#allocation5 + $0x1d8] sm:$0xf0] }
  0x89   :  { %1153 = vmatpush.bf16.msrb.mxu0 %v2199_v34  ;;  %v3151_v34 = vld [vmem:[#allocation5 + $0x284] sm:$0xf] }
  0x8a   :  { %1180 = vmatpush.bf16.msrb.mxu2 %v2607_v32  ;;  %1167 = vmatpush.bf16.msrb.mxu1 %v2391_v35  ;;  %v3079_v32 = vld [vmem:[#allocation5 + $0x44] sm:$0xf]  ;;  %v2443_v42 = vor.u32 %v3151_v34, %v2440_v38  ;;  %v3221_v34 = vld [vmem:[#allocation8 + $0x2c] sm:$0xf0] }
  0x8b   :  { %v3199_v35 = vld [vmem:[#allocation5 + $0x404] sm:$0xf]  ;;  %v2155_v37 = vor.u32 %v3079_v32, %v2152_v33  ;;  %v3261_v38 = vld [vmem:[#allocation8 + $0x16c] sm:$0xf0] }
  0x8c   :  { %1194 = vmatpush.bf16.msrb.mxu3 %v2227_v56  ;;  %v2635_v43 = vor.u32 %v3199_v35, %v2632_v36  ;;  %v2750_v56 = vld [vmem:[#allocation8 + $0x80] sm:$0xf]  ;;  %v3121_v35 = vld [vmem:[#allocation5 + $0x194] sm:$0xf]  ;;  %v2320_v36 = vld [vmem:[#allocation5 + $0x1a8] sm:$0xf0] }
  0x8d   :  { %1154 = vmatpush.bf16.msrb.mxu0 %v2175_v47  ;;  %v3145_v47 = vld [vmem:[#allocation5 + $0x254] sm:$0xf]  ;;  %v2751_v4 = vor.u32 %v3233_v60, %v2750_v56 }
  0x8e   :  { %1181 = vmatpush.bf16.msrb.mxu2 %v2583_v44  ;;  %1168 = vmatpush.bf16.msrb.mxu1 %v2367_v48  ;;  %v3073_v44 = vld [vmem:[#allocation5 + $0x14] sm:$0xf]  ;;  %v2419_v57 = vor.u32 %v3145_v47, %v2416_v52  ;;  %v2323_v47 = vor.u32 %v3121_v35, %v2320_v36  ;;  %v2928_v52 = vld [vmem:[#allocation8 + $0x1f0] sm:$0xf0] }
  0x8f   :  { %v3193_v48 = vld [vmem:[#allocation5 + $0x3d4] sm:$0xf]  ;;  %v2131_v51 = vor.u32 %v3073_v44, %v2128_v46  ;;  %v2686_v46 = vld [vmem:[#allocation8] sm:$0xf]  ;;  %v3040_v36 = vld [vmem:[#allocation8 + $0x2d0] sm:$0xf0] }
  0x90   :  { %1195 = vmatpush.bf16.msrb.mxu3 %v2203_v8  ;;  %v2587_v8 = vor.u32 %v3187_v0, %v2584_v1  ;;  %v3257_v56 = vld [vmem:[#allocation8 + $0x14c] sm:$0xf0]  ;;  %v3271_v1 = vld [vmem:[#allocation8 + $0x1c4] sm:$0xf] }
  0x91   :  { %1155 = vmatpush.bf16.msrb.mxu0 %v2151_v61  ;;  %v3139_v61 = vld [vmem:[#allocation5 + $0x224] sm:$0xf] }
  0x92   :  { %1182 = vmatpush.bf16.msrb.mxu2 %v2559_v59  ;;  %1169 = vmatpush.bf16.msrb.mxu1 %v2343_v63  ;;  %v2611_v59 = vor.u32 %v3193_v48, %v2608_v49  ;;  %v2392_v63 = vld [vmem:[#allocation5 + $0x238] sm:$0xf0]  ;;  %v3217_v49 = vld [vmem:[#allocation8 + $0xc] sm:$0xf0] }
  0x93   :  { %v2395_v6 = vor.u32 %v3139_v61, %v2392_v63  ;;  %v3305_v61 = vld [vmem:[#allocation8 + $0x2cc] sm:$0xf0]  ;;  %v2687_v63 = vor.u32 %v3217_v49, %v2686_v46  ;;  %v2974_v46 = vld [vmem:[#allocation8 + $0x240] sm:$0xf]  ;;  %v2720_v49 = vld [vmem:[#allocation8 + $0x50] sm:$0xf0] }
  0x94   :  { %1196 = vmatpush.bf16.msrb.mxu3 %v2179_v24  ;;  %v3175_v24 = vld [vmem:[#allocation5 + $0x344] sm:$0xf] }
  0x95   :  { %1156 = vmatpush.bf16.msrb.mxu0 %v2127_v12  ;;  %v3181_v12 = vld [vmem:[#allocation5 + $0x374] sm:$0xf]  ;;  %v2539_v33 = vor.u32 %v3175_v24, %v2536_v25  ;;  %v3056_v24 = vld [vmem:[#allocation8 + $0x2f0] sm:$0xf0]  ;;  %v3590_v25 = vld [vmem:[#allocation7] sm:$0x3f] }
  0x96   :  { %1183 = vmatpush.bf16.msrb.mxu2 %v2535_v10  ;;  %1170 = vmatpush.bf16.msrb.mxu1 %v2319_v13  ;;  %v3133_v10 = vld [vmem:[#allocation5 + $0x1f4] sm:$0xf]  ;;  %v2560_v13 = vld [vmem:[#allocation5 + $0x388] sm:$0xf0] }
  0x97   :  { %v2563_v20 = vor.u32 %v3181_v12, %v2560_v13  ;;  %v2915_v12 = vor.u32 %v3271_v1, %v2912_v2  ;;  %v3267_v13 = vld [vmem:[#allocation8 + $0x1a4] sm:$0xf] }
  0x98   :  { %1157 = vmatmul.bf16.vlgmr.msrb.gmra.mxu0 %v3566_v45  ;;  %1197 = vmatpush.bf16.msrb.mxu3 %v2155_v37  ;;  %v2862_v37 = vld [vmem:[#allocation8 + $0x160] sm:$0xf]  ;;  %v3295_v1 = vld [vmem:[#allocation8 + $0x284] sm:$0xf] }
  0x99   :  { %1205 = vmatpush.bf16.msra.mxu0 %v2491_v17  ;;  %1171 = vmatmul.bf16.vlgmr.msrb.gmra.mxu1 %v3568_v50  ;;  %v2718_v17 = vld [vmem:[#allocation8 + $0x40] sm:$0xf] }
  0x9a   :  { %1219 = vmatpush.bf16.msra.mxu1 %v2683_v18  ;;  %1184 = vmatpush.bf16.msrb.mxu2 %v2511_v26  ;;  %v2371_v18 = vor.u32 %v3133_v10, %v2368_v11  ;;  %v3265_v26 = vld [vmem:[#allocation8 + $0x18c] sm:$0xf0]  ;;  %v2719_v29 = vor.u32 %v3225_v21, %v2718_v17  ;;  %v2814_v17 = vld [vmem:[#allocation8 + $0x100] sm:$0xf]  ;;  %v2752_v21 = vld [vmem:[#allocation8 + $0x90] sm:$0xf0] }
  0x9b   :  { %v3301_v11 = vld [vmem:[#allocation8 + $0x2ac] sm:$0xf0] }
  0x9c   :  { %1198 = vmatpush.bf16.msrb.mxu3 %v2131_v51  ;;  %v3275_v51 = vld [vmem:[#allocation8 + $0x1e4] sm:$0xf] }
  0x9d   :  { %1206 = vmatpush.bf16.msra.mxu0 %v2467_v30  ;;  %1185 = vmatmul.bf16.vlgmr.msrb.gmra.mxu2 %v3570_v62  ;;  %v2702_v30 = vld [vmem:[#allocation8 + $0x20] sm:$0xf]  ;;  %v2931_v0 = vor.u32 %v3275_v51, %v2928_v52  ;;  %v3299_v51 = vld [vmem:[#allocation8 + $0x2a4] sm:$0xf]  ;;  %v3024_v52 = vld [vmem:[#allocation8 + $0x2b0] sm:$0xf0] }
  0x9e   :  { %1824 = vmatpush.bf16.msra.mxu2 %v2799_v27  ;;  %1220 = vmatpush.bf16.msra.mxu1 %v2659_v31  ;;  %v3169_v27 = vld [vmem:[#allocation5 + $0x314] sm:$0xf]  ;;  %v2347_v31 = vor.u32 %v3127_v22, %v2344_v23  ;;  %v2703_v44 = vor.u32 %v3221_v34, %v2702_v30  ;;  %v2990_v30 = vld [vmem:[#allocation8 + $0x260] sm:$0xf]  ;;  %v3303_v34 = vld [vmem:[#allocation8 + $0x2c4] sm:$0xf] }
  0x9f   :  { %1199 = vmatmul.bf16.vlgmr.msrb.gmra.mxu3 %v3566_v45  ;;  %v2878_v45 = vld [vmem:[#allocation8 + $0x180] sm:$0xf]  ;;  %v2515_v48 = vor.u32 %v3169_v27, %v2512_v28  ;;  %v3297_v23 = vld [vmem:[#allocation8 + $0x28c] sm:$0xf0]  ;;  %v3043_v41 = vor.u32 %v3303_v34, %v3040_v36  ;;  %v2790_v34 = vld [vmem:[#allocation8 + $0xc8] sm:$0xf] }
  0xa0   :  { %1838 = vmatpush.bf16.msra.mxu3 %v2927_v58  ;;  %v2879_v32 = vor.u32 %v3265_v26, %v2878_v45  ;;  %v3239_v58 = vld [vmem:[#allocation8 + $0xc4] sm:$0xf]  ;;  %v3274_v36 = vld [vmem:[#allocation8 + $0x1d4] sm:$0xf0] }
  0xa1   :  { %1207 = vmatpush.bf16.msra.mxu0 %v2443_v42  ;;  %v2863_v42 = vor.u32 %v3261_v38, %v2862_v37  ;;  %v3263_v45 = vld [vmem:[#allocation8 + $0x184] sm:$0xf]  ;;  %v233_v37 = vperm.slane %v3590_v25, 0 }
  0xa2   :  { %1825 = vmatpush.bf16.msra.mxu2 %v2783_v39  ;;  %1221 = vmatpush.bf16.msra.mxu1 %v2635_v43  ;;  %v3054_v39 = vld [vmem:[#allocation8 + $0x2e0] sm:$0xf]  ;;  %v3309_v43 = vld [vmem:[#allocation8 + $0x2ec] sm:$0xf0] }
  0xa3   :  { %v3055_v53 = vor.u32 %v3309_v43, %v3054_v39  ;;  %v3259_v39 = vld [vmem:[#allocation8 + $0x164] sm:$0xf] }
  0xa4   :  { %1839 = vmatpush.bf16.msra.mxu3 %v2911_v7  ;;  %v3022_v7 = vld [vmem:[#allocation8 + $0x2a0] sm:$0xf] }
  0xa5   :  { %1208 = vmatpush.bf16.msra.mxu0 %v2419_v57  ;;  %v3038_v57 = vld [vmem:[#allocation8 + $0x2c0] sm:$0xf]  ;;  %v3023_v15 = vor.u32 %v3301_v11, %v3022_v7  ;;  %v3251_v7 = vld [vmem:[#allocation8 + $0x124] sm:$0xf] }
  0xa6   :  { %1826 = vmatpush.bf16.msra.mxu2 %v2767_v55  ;;  %1222 = vmatpush.bf16.msra.mxu1 %v2611_v59  ;;  %v2846_v55 = vld [vmem:[#allocation8 + $0x140] sm:$0xf]  ;;  %v2784_v59 = vld [vmem:[#allocation8 + $0xd0] sm:$0xf0]  ;;  %v3039_v3 = vor.u32 %v3305_v61, %v3038_v57  ;;  %v3285_v61 = vld [vmem:[#allocation8 + $0x22c] sm:$0xf0] }
  0xa7   :  { %v2847_v60 = vor.u32 %v3257_v56, %v2846_v55  ;;  %v3027_v56 = vor.u32 %v3299_v51, %v3024_v52  ;;  %v2774_v51 = vld [vmem:[#allocation8 + $0xa8] sm:$0xf] }
  0xa8   :  { %1840 = vmatpush.bf16.msra.mxu3 %v2895_v19  ;;  %v3006_v19 = vld [vmem:[#allocation8 + $0x280] sm:$0xf]  ;;  %v2902_v52 = vld [vmem:[#allocation8 + $0x1a8] sm:$0xf] }
  0xa9   :  { %1209 = vmatpush.bf16.msra.mxu0 %v2395_v6  ;;  %v3253_v6 = vld [vmem:[#allocation8 + $0x12c] sm:$0xf0]  ;;  %v3007_v26 = vor.u32 %v3297_v23, %v3006_v19  ;;  %v2806_v19 = vld [vmem:[#allocation8 + $0xe8] sm:$0xf] }
  0xaa   :  { %1827 = vmatpush.bf16.msra.mxu2 %v2751_v4  ;;  %1223 = vmatpush.bf16.msra.mxu1 %v2587_v8  ;;  %v2787_v4 = vor.u32 %v3239_v58, %v2784_v59  ;;  %v3235_v8 = vld [vmem:[#allocation8 + $0xa4] sm:$0xf]  ;;  %v2831_v10 = vor.u32 %v3253_v6, %v2830_v5  ;;  %v2848_v59 = vld [vmem:[#allocation8 + $0x150] sm:$0xf0] }
  0xab   :  { %v2688_v5 = vld [vmem:[#allocation8 + $0x10] sm:$0xf0] }
  0xac   :  { %1841 = vmatpush.bf16.msra.mxu3 %v2879_v32  ;;  %v3227_v32 = vld [vmem:[#allocation8 + $0x64] sm:$0xf] }
  0xad   :  { %1210 = vmatpush.bf16.msra.mxu0 %v2371_v18  ;;  %v3249_v18 = vld [vmem:[#allocation8 + $0x10c] sm:$0xf0] }
  0xae   :  { %1828 = vmatpush.bf16.msra.mxu2 %v2735_v16  ;;  %1224 = vmatpush.bf16.msra.mxu1 %v2563_v20  ;;  %v2771_v16 = vor.u32 %v3235_v8, %v2768_v9  ;;  %v3231_v20 = vld [vmem:[#allocation8 + $0x84] sm:$0xf]  ;;  %v2815_v22 = vor.u32 %v3249_v18, %v2814_v17  ;;  %v2992_v18 = vld [vmem:[#allocation8 + $0x270] sm:$0xf0] }
  0xaf   :  { %v2755_v28 = vor.u32 %v3231_v20, %v2752_v21  ;;  %v3291_v17 = vld [vmem:[#allocation8 + $0x264] sm:$0xf]  ;;  %v2934_v20 = vld [vmem:[#allocation8 + $0x1e8] sm:$0xf]  ;;  %v3278_v21 = vld [vmem:[#allocation8 + $0x1f4] sm:$0xf0] }
  0xb0   :  { %1842 = vmatpush.bf16.msra.mxu3 %v2863_v42  ;;  %v2995_v23 = vor.u32 %v3291_v17, %v2992_v18  ;;  %v2870_v17 = vld [vmem:[#allocation8 + $0x168] sm:$0xf]  ;;  %v3262_v18 = vld [vmem:[#allocation8 + $0x174] sm:$0xf0] }
  0xb1   :  { %1211 = vmatpush.bf16.msra.mxu0 %v2347_v31  ;;  %v3293_v31 = vld [vmem:[#allocation8 + $0x26c] sm:$0xf0] }
  0xb2   :  { %1829 = vmatpush.bf16.msra.mxu2 %v2719_v29  ;;  %1225 = vmatpush.bf16.msra.mxu1 %v2539_v33  ;;  %v2880_v29 = vld [vmem:[#allocation8 + $0x190] sm:$0xf0]  ;;  %v2991_v40 = vor.u32 %v3293_v31, %v2990_v30  ;;  %v2935_v30 = vor.u32 %v3278_v21, %v2934_v20 }
  0xb3   :  { %v2736_v33 = vld [vmem:[#allocation8 + $0x70] sm:$0xf0]  ;;  %v2883_v38 = vor.u32 %v3263_v45, %v2880_v29 }
  0xb4   :  { %1843 = vmatpush.bf16.msra.mxu3 %v2847_v60  ;;  %v2739_v42 = vor.u32 %v3227_v32, %v2736_v33  ;;  %v2958_v60 = vld [vmem:[#allocation8 + $0x220] sm:$0xf]  ;;  %v3287_v32 = vld [vmem:[#allocation8 + $0x244] sm:$0xf]  ;;  %v2976_v33 = vld [vmem:[#allocation8 + $0x250] sm:$0xf0] }
  0xb5   :  { %1212 = vmatpush.bf16.msra.mxu0 %v2323_v47  ;;  %v990_v35 = vpop.f32.mrf.mxu0  ;;  %v3289_v47 = vld [vmem:[#allocation8 + $0x24c] sm:$0xf0]  ;;  %v2959_v8 = vor.u32 %v3285_v61, %v2958_v60  ;;  %v3046_v60 = vld [vmem:[#allocation8 + $0x2c8] sm:$0xf]  ;;  %v3306_v61 = vld [vmem:[#allocation8 + $0x2d4] sm:$0xf0] }
  0xb6   :  { %1830 = vmatpush.bf16.msra.mxu2 %v2703_v44  ;;  %1226 = vmatpush.bf16.msra.mxu1 %v2515_v48  ;;  %v2864_v44 = vld [vmem:[#allocation8 + $0x170] sm:$0xf0]  ;;  %v3223_v48 = vld [vmem:[#allocation8 + $0x44] sm:$0xf]  ;;  %v2975_v55 = vor.u32 %v3289_v47, %v2974_v46  ;;  %v991_v58 = vadd.f32 %v990_v35, %v233_v37  ;;  %v2918_v35 = vld [vmem:[#allocation8 + $0x1c8] sm:$0xf] }
  0xb7   :  { %v2723_v57 = vor.u32 %v3223_v48, %v2720_v49  ;;  %v2919_v47 = vor.u32 %v3274_v36, %v2918_v35  ;;  %v3283_v48 = vld [vmem:[#allocation8 + $0x224] sm:$0xf]  ;;  %v2960_v49 = vld [vmem:[#allocation8 + $0x230] sm:$0xf0]  ;;  %v3294_v35 = vld [vmem:[#allocation8 + $0x274] sm:$0xf0] }
  0xb8   :  { %1213 = vmatmul.bf16.vlgmr.msra.gmra.mxu0 %v3568_v50  ;;  %1844 = vmatpush.bf16.msra.mxu3 %v2831_v10  ;;  %v3307_v50 = vld [vmem:[#allocation8 + $0x2e4] sm:$0xf]  ;;  %v1004_v43 = vpop.f32.mrf.mxu1  ;;  %v2710_v36 = vld [vmem:[#allocation8 + $0x28] sm:$0xf] }
  0xb9   :  { %1852 = vmatpush.bf16.msrb.mxu0 %v3055_v53  ;;  %1227 = vmatmul.bf16.vlgmr.msra.gmra.mxu1 %v3570_v62  ;;  %v2899_v62 = vor.u32 %v3267_v13, %v2896_v14  ;;  %v3059_v27 = vor.u32 %v3307_v50, %v3056_v24  ;;  %v2867_v53 = vor.u32 %v3259_v39, %v2864_v44  ;;  %v2832_v13 = vld [vmem:[#allocation8 + $0x130] sm:$0xf0]  ;;  %v2942_v14 = vld [vmem:[#allocation8 + $0x200] sm:$0xf]  ;;  %v3246_v50 = vld [vmem:[#allocation8 + $0xf4] sm:$0xf0] }
  0xba   :  { %1866 = vmatpush.bf16.msrb.mxu1 %v2803_v54  ;;  %1831 = vmatpush.bf16.msra.mxu2 %v2687_v63  ;;  %v3255_v54 = vld [vmem:[#allocation8 + $0x144] sm:$0xf]  ;;  %v1005_v10 = vadd.f32 %v1004_v43, %v991_v58  ;;  %v2835_v24 = vor.u32 %v3251_v7, %v2832_v13  ;;  %v2807_v29 = vor.u32 %v3246_v50, %v2806_v19  ;;  %v3310_v43 = vld [vmem:[#allocation8 + $0x2f4] sm:$0xf0]  ;;  %v234_v58 = vperm.slane %v3590_v25, 1 }
  0xbb   :  { %v3219_v63 = vld [vmem:[#allocation8 + $0x24] sm:$0xf]  ;;  %v2851_v6 = vor.u32 %v3255_v54, %v2848_v59  ;;  %v2963_v54 = vor.u32 %v3283_v48, %v2960_v49  ;;  %v3302_v13 = vld [vmem:[#allocation8 + $0x2b4] sm:$0xf0]  ;;  %v2871_v50 = vor.u32 %v3262_v18, %v2870_v17  ;;  %v2822_v48 = vld [vmem:[#allocation8 + $0x108] sm:$0xf] }
  0xbc   :  { %1845 = vmatpush.bf16.msra.mxu3 %v2815_v22  ;;  %v3250_v49 = vld [vmem:[#allocation8 + $0x114] sm:$0xf0]  ;;  %v3236_v17 = vld [vmem:[#allocation8 + $0xac] sm:$0xf]  ;;  %v2776_v18 = vld [vmem:[#allocation8 + $0xb8] sm:$0xf0] }
  0xbd   :  { %1853 = vmatpush.bf16.msrb.mxu0 %v3039_v3  ;;  %v992_v2 = vpop.f32.mrf.mxu0  ;;  %v3008_v3 = vld [vmem:[#allocation8 + $0x290] sm:$0xf0] }
  0xbe   :  { %1880 = vmatpush.bf16.msrb.mxu2 %v2931_v0  ;;  %1867 = vmatpush.bf16.msrb.mxu1 %v2787_v4  ;;  %v2704_v0 = vld [vmem:[#allocation8 + $0x30] sm:$0xf0]  ;;  %v3215_v4 = vld [vmem:[#allocation8 + $0x4] sm:$0xf]  ;;  %v3011_v9 = vor.u32 %v3295_v1, %v3008_v3 }
  0xbf   :  { %v2707_v11 = vor.u32 %v3219_v63, %v2704_v0  ;;  %v2944_v3 = vld [vmem:[#allocation8 + $0x210] sm:$0xf0] }
  0xc0   :  { %1894 = vmatpush.bf16.msrb.mxu3 %v3059_v27  ;;  %v1006_v22 = vpop.f32.mrf.mxu1  ;;  %v3247_v27 = vld [vmem:[#allocation8 + $0x104] sm:$0xf] }
  0xc1   :  { %1854 = vmatpush.bf16.msrb.mxu0 %v3023_v15  ;;  %v3281_v15 = vld [vmem:[#allocation8 + $0x20c] sm:$0xf0] }
  0xc2   :  { %1881 = vmatpush.bf16.msrb.mxu2 %v2915_v12  ;;  %1868 = vmatpush.bf16.msrb.mxu1 %v2771_v16  ;;  %v1018_v12 = vpop.f32.mrf.mxu2  ;;  %v993_v16 = vadd.f32 %v992_v2, %v233_v37  ;;  %v2979_v37 = vor.u32 %v3287_v32, %v2976_v33  ;;  %v3279_v2 = vld [vmem:[#allocation8 + $0x204] sm:$0xf]  ;;  %v2998_v32 = vld [vmem:[#allocation8 + $0x268] sm:$0xf] }
  0xc3   :  { %v1019_v45 = vadd.f32 %v1018_v12, %v1005_v10  ;;  %v2947_v7 = vor.u32 %v3279_v2, %v2944_v3  ;;  %v3030_v10 = vld [vmem:[#allocation8 + $0x2a8] sm:$0xf] }
  0xc4   :  { %1895 = vmatpush.bf16.msrb.mxu3 %v3043_v41  ;;  %v1007_v31 = vadd.f32 %v1006_v22, %v993_v16  ;;  %v3031_v21 = vor.u32 %v3302_v13, %v3030_v10  ;;  %v3014_v22 = vld [vmem:[#allocation8 + $0x288] sm:$0xf]  ;;  %v3286_v10 = vld [vmem:[#allocation8 + $0x234] sm:$0xf0] }
  0xc5   :  { %1855 = vmatpush.bf16.msrb.mxu0 %v3007_v26  ;;  %v2691_v26 = vor.u32 %v3215_v4, %v2688_v5  ;;  %v2758_v4 = vld [vmem:[#allocation8 + $0x88] sm:$0xf] }
  0xc6   :  { %1882 = vmatpush.bf16.msrb.mxu2 %v2899_v62  ;;  %1869 = vmatpush.bf16.msrb.mxu1 %v2755_v28  ;;  %v2943_v62 = vor.u32 %v3281_v15, %v2942_v14  ;;  %v2816_v28 = vld [vmem:[#allocation8 + $0x110] sm:$0xf0]  ;;  %v2886_v5 = vld [vmem:[#allocation8 + $0x188] sm:$0xf]  ;;  %v3230_v15 = vld [vmem:[#allocation8 + $0x74] sm:$0xf0] }
  0xc7   :  { %v2819_v39 = vor.u32 %v3247_v27, %v2816_v28  ;;  %v2742_v14 = vld [vmem:[#allocation8 + $0x68] sm:$0xf] }
  0xc8   :  { %1896 = vmatpush.bf16.msrb.mxu3 %v3027_v56  ;;  %v2854_v28 = vld [vmem:[#allocation8 + $0x148] sm:$0xf] }
  0xc9   :  { %1856 = vmatpush.bf16.msrb.mxu0 %v2991_v40  ;;  %v1233_v40 = vmax.f32 %v1019_v45, 0.0  ;;  %v2726_v45 = vld [vmem:[#allocation8 + $0x48] sm:$0xf] }
  0xca   :  { %1883 = vmatpush.bf16.msrb.mxu2 %v2883_v38  ;;  %1870 = vmatpush.bf16.msrb.mxu1 %v2739_v42  ;;  %v3242_v38 = vld [vmem:[#allocation8 + $0xd4] sm:$0xf0]  ;;  %v1020_v41 = vpop.f32.mrf.mxu2  ;;  %v3062_v42 = vld [vmem:[#allocation8 + $0x2e8] sm:$0xf] }
  0xcb   :  { %v2791_v44 = vor.u32 %v3242_v38, %v2790_v34  ;;  %v1021_v46 = vadd.f32 %v1020_v41, %v1007_v31  ;;  %v3063_v59 = vor.u32 %v3310_v43, %v3062_v42 }
  0xcc   :  { %1897 = vmatpush.bf16.msrb.mxu3 %v3011_v9  ;;  %v3047_v9 = vor.u32 %v3306_v61, %v3046_v60  ;;  %v2694_v60 = vld [vmem:[#allocation8 + $0x8] sm:$0xf]  ;;  %v3218_v61 = vld [vmem:[#allocation8 + $0x14] sm:$0xf0] }
  0xcd   :  { %1857 = vmatpush.bf16.msrb.mxu0 %v2975_v55  ;;  %v3238_v55 = vld [vmem:[#allocation8 + $0xb4] sm:$0xf0]  ;;  %v1239_v56 = vmax.f32 %v1021_v46, 0.0 }
  0xce   :  { %1884 = vmatpush.bf16.msrb.mxu2 %v2867_v53  ;;  %1871 = vmatpush.bf16.msrb.mxu1 %v2723_v57  ;;  %v3270_v53 = vld [vmem:[#allocation8 + $0x1b4] sm:$0xf0]  ;;  %v1032_v57 = vpop.f32.mrf.mxu3  ;;  %v2775_v63 = vor.u32 %v3238_v55, %v2774_v51  ;;  %v3308_v51 = vld [vmem:[#allocation8 + $0x2ec] sm:$0xf]  ;;  %v2808_v55 = vld [vmem:[#allocation8 + $0xf8] sm:$0xf0] }
  0xcf   :  { %v3594_v0 = vpack.c.bf16 %v1239_v56, %v1233_v40  ;;  %v2903_v1 = vor.u32 %v3270_v53, %v2902_v52  ;;  %v1033_v16 = vadd.f32 %v1032_v57, %v234_v58  ;;  %v3254_v40 = vld [vmem:[#allocation8 + $0x134] sm:$0xf0]  ;;  %v3064_v56 = vld [vmem:[#allocation8 + $0x2f8] sm:$0xf0]  ;;  %v2982_v57 = vld [vmem:[#allocation8 + $0x248] sm:$0xf] }
  0xd0   :  { %1898 = vmatpush.bf16.msrb.mxu3 %v2995_v23  ;;  %v2743_v23 = vor.u32 %v3230_v15, %v2742_v14  ;;  %v3067_v3 = vor.u32 %v3308_v51, %v3064_v56  ;;  %v3300_v15 = vld [vmem:[#allocation8 + $0x2ac] sm:$0xf]  ;;  %v2968_v56 = vld [vmem:[#allocation8 + $0x238] sm:$0xf0] }
  0xd1   :  { %1858 = vmatpush.bf16.msrb.mxu0 %v2959_v8  ;;  %v3234_v8 = vld [vmem:[#allocation8 + $0x94] sm:$0xf0]  ;;  %1832 = vmatmul.bf16.vlgmr.msra.gmra.mxu2 %v3594_v0  ;;  %v3220_v51 = vld [vmem:[#allocation8 + $0x2c] sm:$0xf] }
  0xd2   :  { %1885 = vmatpush.bf16.msrb.mxu2 %v2851_v6  ;;  %1872 = vmatpush.bf16.msrb.mxu1 %v2707_v11  ;;  %v3266_v6 = vld [vmem:[#allocation8 + $0x194] sm:$0xf0]  ;;  %v2759_v11 = vor.u32 %v3234_v8, %v2758_v4  ;;  %v3304_v4 = vld [vmem:[#allocation8 + $0x2cc] sm:$0xf]  ;;  %v3048_v8 = vld [vmem:[#allocation8 + $0x2d8] sm:$0xf0] }
  0xd3   :  { %v2887_v12 = vor.u32 %v3266_v6, %v2886_v5  ;;  %v3240_v6 = vld [vmem:[#allocation8 + $0xcc] sm:$0xf]  ;;  %v3051_v14 = vor.u32 %v3304_v4, %v3048_v8 }
  0xd4   :  { %1899 = vmatpush.bf16.msrb.mxu3 %v2979_v37  ;;  %v3222_v37 = vld [vmem:[#allocation8 + $0x34] sm:$0xf0] }
  0xd5   :  { %1859 = vmatpush.bf16.msrb.mxu0 %v2943_v62  ;;  %v1046_v19 = vpop.f32.mrf.mxu0  ;;  %v3298_v62 = vld [vmem:[#allocation8 + $0x294] sm:$0xf0]  ;;  %v2711_v46 = vor.u32 %v3222_v37, %v2710_v36 }
  0xd6   :  { %1886 = vmatpush.bf16.msrb.mxu2 %v2835_v24  ;;  %1873 = vmatpush.bf16.msrb.mxu1 %v2691_v26  ;;  %v1060_v20 = vpop.f32.mrf.mxu1  ;;  %v1034_v24 = vpop.f32.mrf.mxu3  ;;  %v3226_v26 = vld [vmem:[#allocation8 + $0x54] sm:$0xf0]  ;;  %v1047_v27 = vadd.f32 %v1046_v19, %v1033_v16  ;;  %v3015_v31 = vor.u32 %v3298_v62, %v3014_v22  ;;  %v3032_v19 = vld [vmem:[#allocation8 + $0x2b8] sm:$0xf0]  ;;  %v2779_v22 = vor.u32 %v3236_v17, %v2776_v18  ;;  %v3232_v62 = vld [vmem:[#allocation8 + $0x8c] sm:$0xf] }
  0xd7   :  { %v2727_v33 = vor.u32 %v3226_v26, %v2726_v45  ;;  %v2760_v45 = vld [vmem:[#allocation8 + $0x98] sm:$0xf0]  ;;  %v235_v26 = vperm.slane %v3590_v25, 2 }
  0xd8   :  { %1900 = vmatpush.bf16.msrb.mxu3 %v2963_v54  ;;  %v1061_v38 = vadd.f32 %v1060_v20, %v1047_v27  ;;  %v3244_v54 = vld [vmem:[#allocation8 + $0xec] sm:$0xf]  ;;  %v2950_v20 = vld [vmem:[#allocation8 + $0x208] sm:$0xf]  ;;  %v2904_v17 = vld [vmem:[#allocation8 + $0x1b8] sm:$0xf0] }
  0xd9   :  { %1908 = vmatpush.bf16.msra.mxu0 %v2807_v29  ;;  %1874 = vmatmul.bf16.vlgmr.msrb.gmra.mxu1 %v3594_v0  ;;  %v3258_v29 = vld [vmem:[#allocation8 + $0x154] sm:$0xf0]  ;;  %v3296_v27 = vld [vmem:[#allocation8 + $0x28c] sm:$0xf] }
  0xda   :  { %1922 = vmatpush.bf16.msra.mxu1 %v2935_v30  ;;  %1887 = vmatpush.bf16.msrb.mxu2 %v2819_v39  ;;  %v1035_v30 = vadd.f32 %v1034_v24, %v234_v58  ;;  %v2855_v34 = vor.u32 %v3258_v29, %v2854_v28  ;;  %v2838_v39 = vld [vmem:[#allocation8 + $0x128] sm:$0xf]  ;;  %v1234_v52 = vmax.f32 %v1061_v38, 0.0  ;;  %v3290_v58 = vld [vmem:[#allocation8 + $0x254] sm:$0xf0]  ;;  %v2763_v29 = vor.u32 %v3232_v62, %v2760_v45 }
  0xdb   :  { %v2983_v5 = vor.u32 %v3290_v58, %v2982_v57  ;;  %v3016_v28 = vld [vmem:[#allocation8 + $0x298] sm:$0xf0] }
  0xdc   :  { %1901 = vmatpush.bf16.msrb.mxu3 %v2947_v7  ;;  %v2792_v7 = vld [vmem:[#allocation8 + $0xd8] sm:$0xf0] }
  0xdd   :  { %1909 = vmatpush.bf16.msra.mxu0 %v2791_v44  ;;  %v1048_v41 = vpop.f32.mrf.mxu0  ;;  %v2999_v44 = vor.u32 %v3294_v35, %v2998_v32  ;;  %v2744_v32 = vld [vmem:[#allocation8 + $0x78] sm:$0xf0] }
  0xde   :  { %1923 = vmatpush.bf16.msra.mxu1 %v2919_v47  ;;  %1936 = vmatpush.bf16.msra.mxu2 %v3063_v59  ;;  %v1049_v42 = vadd.f32 %v1048_v41, %v1035_v30  ;;  %v1062_v43 = vpop.f32.mrf.mxu1  ;;  %v2839_v47 = vor.u32 %v3254_v40, %v2838_v39  ;;  %v3019_v30 = vor.u32 %v3296_v27, %v3016_v28  ;;  %v3000_v35 = vld [vmem:[#allocation8 + $0x278] sm:$0xf0]  ;;  %v3224_v40 = vld [vmem:[#allocation8 + $0x4c] sm:$0xf]  ;;  %v237_v27 = vperm.slane %v3590_v25, 4 }
  0xdf   :  { %v2728_v41 = vld [vmem:[#allocation8 + $0x58] sm:$0xf0]  ;;  %v3256_v28 = vld [vmem:[#allocation8 + $0x14c] sm:$0xf] }
  0xe0   :  { %v1063_v53 = vadd.f32 %v1062_v43, %v1049_v42  ;;  %v1074_v13 = vpop.f32.mrf.mxu2  ;;  %v2872_v62 = vld [vmem:[#allocation8 + $0x178] sm:$0xf0] }
  0xe1   :  { %1910 = vmatpush.bf16.msra.mxu0 %v2775_v63  ;;  %v2823_v63 = vor.u32 %v3250_v49, %v2822_v48  ;;  %v2731_v48 = vor.u32 %v3224_v40, %v2728_v41  ;;  %v3248_v41 = vld [vmem:[#allocation8 + $0x10c] sm:$0xf] }
  0xe2   :  { %1924 = vmatpush.bf16.msra.mxu1 %v2903_v1  ;;  %1937 = vmatpush.bf16.msra.mxu2 %v3047_v9  ;;  %v1240_v59 = vmax.f32 %v1063_v53, 0.0  ;;  %v2811_v1 = vor.u32 %v3244_v54, %v2808_v55  ;;  %v2966_v9 = vld [vmem:[#allocation8 + $0x228] sm:$0xf]  ;;  %v3284_v55 = vld [vmem:[#allocation8 + $0x22c] sm:$0xf] }
  0xe3   :  { %v2967_v16 = vor.u32 %v3286_v10, %v2966_v9 }
  0xe4   :  { %v3598_v2 = vpack.c.bf16 %v1240_v59, %v1234_v52  ;;  %v2712_v52 = vld [vmem:[#allocation8 + $0x38] sm:$0xf0]  ;;  %v3276_v59 = vld [vmem:[#allocation8 + $0x1ec] sm:$0xf] }
  0xe5   :  { %1911 = vmatpush.bf16.msra.mxu0 %v2759_v11  ;;  %v2695_v11 = vor.u32 %v3218_v61, %v2694_v60  ;;  %v2936_v60 = vld [vmem:[#allocation8 + $0x1f8] sm:$0xf0]  ;;  %v2715_v61 = vor.u32 %v3220_v51, %v2712_v52 }
  0xe6   :  { %1925 = vmatpush.bf16.msra.mxu1 %v2887_v12  ;;  %1938 = vmatpush.bf16.msra.mxu2 %v3031_v21  ;;  %v2795_v12 = vor.u32 %v3240_v6, %v2792_v7  ;;  %v3282_v21 = vld [vmem:[#allocation8 + $0x214] sm:$0xf0]  ;;  %v3280_v6 = vld [vmem:[#allocation8 + $0x20c] sm:$0xf]  ;;  %v2952_v7 = vld [vmem:[#allocation8 + $0x218] sm:$0xf0]  ;;  %v2939_v9 = vor.u32 %v3276_v59, %v2936_v60 }
  0xe7   :  { %1846 = vmatmul.bf16.vlgmr.msra.gmra.mxu3 %v3598_v2  ;;  %1888 = vmatmul.bf16.vlgmr.msrb.gmra.mxu2 %v3598_v2  ;;  %v2951_v24 = vor.u32 %v3282_v21, %v2950_v20  ;;  %v3264_v20 = vld [vmem:[#allocation8 + $0x18c] sm:$0xf]  ;;  %v2888_v21 = vld [vmem:[#allocation8 + $0x198] sm:$0xf0] }
  0xe8   :  { %1950 = vmatpush.bf16.msra.mxu3 %v2811_v1  ;;  %v1076_v36 = vpop.f32.mrf.mxu2  ;;  %v3216_v1 = vld [vmem:[#allocation8 + $0xc] sm:$0xf] }
  0xe9   :  { %1912 = vmatpush.bf16.msra.mxu0 %v2743_v23  ;;  %v1088_v23 = vpop.f32.mrf.mxu3  ;;  %v1077_v43 = vadd.f32 %v1076_v36, %v235_v26 }
  0xea   :  { %1926 = vmatpush.bf16.msra.mxu1 %v2871_v50  ;;  %1939 = vmatpush.bf16.msra.mxu2 %v3015_v31  ;;  %v3035_v50 = vor.u32 %v3300_v15, %v3032_v19  ;;  %v3228_v31 = vld [vmem:[#allocation8 + $0x6c] sm:$0xf] }
  0xeb   :  { %v2747_v38 = vor.u32 %v3228_v31, %v2744_v32 }
  0xec   :  { %1951 = vmatpush.bf16.msra.mxu3 %v2795_v12  ;;  %v2920_v12 = vld [vmem:[#allocation8 + $0x1d8] sm:$0xf0] }
  0xed   :  { %1913 = vmatpush.bf16.msra.mxu0 %v2727_v33  ;;  %v1075_v33 = vadd.f32 %v1074_v13, %v235_v26 }
  0xee   :  { %1927 = vmatpush.bf16.msra.mxu1 %v2855_v34  ;;  %1940 = vmatpush.bf16.msra.mxu2 %v2999_v44  ;;  %v3292_v34 = vld [vmem:[#allocation8 + $0x26c] sm:$0xf] }
  0xef   :  { %v3003_v39 = vor.u32 %v3292_v34, %v3000_v35  ;;  %v1089_v42 = vadd.f32 %v1088_v23, %v1075_v33  ;;  %v3288_v44 = vld [vmem:[#allocation8 + $0x24c] sm:$0xf]  ;;  %v2891_v23 = vor.u32 %v3264_v20, %v2888_v21 }
  0xf0   :  { %1952 = vmatpush.bf16.msra.mxu3 %v2779_v22 }
  0xf1   :  { %1914 = vmatpush.bf16.msra.mxu0 %v2711_v46  ;;  %v2984_v46 = vld [vmem:[#allocation8 + $0x258] sm:$0xf0] }
  0xf2   :  { %1928 = vmatpush.bf16.msra.mxu1 %v2839_v47  ;;  %1941 = vmatpush.bf16.msra.mxu2 %v2983_v5  ;;  %v1090_v47 = vpop.f32.mrf.mxu3  ;;  %v2987_v49 = vor.u32 %v3288_v44, %v2984_v46 }
  0xf3   :  { %v1091_v53 = vadd.f32 %v1090_v47, %v1077_v43 }
  0xf4   :  { %1953 = vmatpush.bf16.msra.mxu3 %v2763_v29  ;;  %v2856_v29 = vld [vmem:[#allocation8 + $0x158] sm:$0xf0] }
  0xf5   :  { %1915 = vmatpush.bf16.msra.mxu0 %v2695_v11  ;;  %v1102_v37 = vpop.f32.mrf.mxu0  ;;  %v3272_v11 = vld [vmem:[#allocation8 + $0x1cc] sm:$0xf]  ;;  %v2859_v35 = vor.u32 %v3256_v28, %v2856_v29 }
  0xf6   :  { %1929 = vmatpush.bf16.msra.mxu1 %v2823_v63  ;;  %1942 = vmatpush.bf16.msra.mxu2 %v2967_v16  ;;  %v1103_v54 = vadd.f32 %v1102_v37, %v1089_v42  ;;  %v2971_v63 = vor.u32 %v3284_v55, %v2968_v56  ;;  %v1116_v8 = vpop.f32.mrf.mxu1  ;;  %v2923_v15 = vor.u32 %v3272_v11, %v2920_v12  ;;  %v3268_v16 = vld [vmem:[#allocation8 + $0x1ac] sm:$0xf]  ;;  %v2824_v42 = vld [vmem:[#allocation8 + $0x118] sm:$0xf0] }
  0xf7   :  { %v2907_v19 = vor.u32 %v3268_v16, %v2904_v17  ;;  %v3252_v37 = vld [vmem:[#allocation8 + $0x12c] sm:$0xf]  ;;  %v2827_v47 = vor.u32 %v3248_v41, %v2824_v42 }
  0xf8   :  { %1954 = vmatpush.bf16.msra.mxu3 %v2747_v38  ;;  %v1235_v4 = vmax.f32 %v1103_v54, 0.0  ;;  %v2840_v38 = vld [vmem:[#allocation8 + $0x138] sm:$0xf0] }
  0xf9   :  { %1930 = vmatmul.bf16.vlgmr.msra.gmra.mxu1 %v3598_v2 }
  0xfa   :  { %1978 = vmatpush.bf16.msrb.mxu1 %v3067_v3  ;;  %1943 = vmatpush.bf16.msra.mxu2 %v2951_v24  ;;  %v2696_v3 = vld [vmem:[#allocation8 + $0x18] sm:$0xf0]  ;;  %v3260_v24 = vld [vmem:[#allocation8 + $0x16c] sm:$0xf] }
  0xfb   :  { %v2699_v13 = vor.u32 %v3216_v1, %v2696_v3  ;;  %v2875_v45 = vor.u32 %v3260_v24, %v2872_v62  ;;  %v238_v3 = vperm.slane %v3590_v25, 5 }
  0xfc   :  { %1955 = vmatpush.bf16.msra.mxu3 %v2731_v48 }
  0xfd   :  { %v1104_v57 = vpop.f32.mrf.mxu0 }
  0xfe   :  { %1979 = vmatpush.bf16.msrb.mxu1 %v3051_v14  ;;  %v1105_v58 = vadd.f32 %v1104_v57, %v1091_v53  ;;  %v2955_v14 = vor.u32 %v3280_v6, %v2952_v7  ;;  %v1118_v22 = vpop.f32.mrf.mxu1 }
 0x100   :  { %v1241_v5 = vmax.f32 %v1105_v58, 0.0  ;;  %1956 = vmatpush.bf16.msra.mxu3 %v2715_v61  ;;  %v1130_v18 = vpop.f32.mrf.mxu2 }
 0x102   :  { %1980 = vmatpush.bf16.msrb.mxu1 %v3035_v50  ;;  %v1247_v10 = vpack.c.bf16 %v1241_v5, %v1235_v4  ;;  %v236_v50 = vperm.slane %v3590_v25, 3  ;;  %v1144_v33 = vpop.f32.mrf.mxu3 }
 0x104   :  { %1860 = vmatmul.bf16.vlgmr.msrb.gmra.mxu0 %v1247_v10  ;;  %1902 = vmatmul.bf16.vlgmr.msrb.gmra.mxu3 %v1247_v10  ;;  %v1117_v26 = vadd.f32 %v1116_v8, %v236_v50  ;;  %v1119_v40 = vadd.f32 %v1118_v22, %v236_v50 }
 0x105   :  { %1944 = vmatmul.bf16.vlgmr.msra.gmra.mxu2 %v1247_v10  ;;  %1964 = vmatpush.bf16.msrb.mxu0 %v2939_v9 }
 0x106   :  { %1981 = vmatpush.bf16.msrb.mxu1 %v3019_v30  ;;  %1957 = vmatpush.bf16.msra.mxu3 %v2699_v13  ;;  %v1131_v34 = vadd.f32 %v1130_v18, %v1117_v26 }
 0x108   :  { %v1132_v30 = vpop.f32.mrf.mxu2  ;;  %v1145_v44 = vadd.f32 %v1144_v33, %v1131_v34 }
 0x109   :  { %1965 = vmatpush.bf16.msrb.mxu0 %v2923_v15 }
 0x10a   :  { %1982 = vmatpush.bf16.msrb.mxu1 %v3003_v39  ;;  %v2843_v39 = vor.u32 %v3252_v37, %v2840_v38  ;;  %v1146_v54 = vpop.f32.mrf.mxu3 }
 0x10d   :  { %1966 = vmatpush.bf16.msrb.mxu0 %v2907_v19 }
 0x10e   :  { %1983 = vmatpush.bf16.msrb.mxu1 %v2987_v49  ;;  %v1236_v49 = vmax.f32 %v1145_v44, 0.0 }
 0x111   :  { %1967 = vmatpush.bf16.msrb.mxu0 %v2891_v23 }
 0x112   :  { %1984 = vmatpush.bf16.msrb.mxu1 %v2971_v63 }
 0x114   :  { %1916 = vmatmul.bf16.vlgmr.msra.gmra.mxu0 %v3594_v0  ;;  %1958 = vmatmul.bf16.vlgmr.msra.gmra.mxu3 %v3594_v0  ;;  %v1133_v0 = vadd.f32 %v1132_v30, %v1119_v40 }
 0x115   :  { %v1158_v31 = vpop.f32.mrf.mxu0  ;;  %1968 = vmatpush.bf16.msrb.mxu0 %v2875_v45 }
 0x116   :  { %1985 = vmatpush.bf16.msrb.mxu1 %v2955_v14  ;;  %v1172_v32 = vpop.f32.mrf.mxu1  ;;  %v1159_v36 = vadd.f32 %v1158_v31, %v237_v27  ;;  %v1147_v58 = vadd.f32 %v1146_v54, %v1133_v0 }
 0x118   :  { %v1173_v43 = vadd.f32 %v1172_v32, %v1159_v36  ;;  %v1242_v60 = vmax.f32 %v1147_v58, 0.0 }
 0x119   :  { %1986 = vmatmul.bf16.vlgmr.msrb.gmra.mxu1 %v1247_v10  ;;  %1969 = vmatpush.bf16.msrb.mxu0 %v2859_v35 }
 0x11d   :  { %v1160_v46 = vpop.f32.mrf.mxu0  ;;  %1970 = vmatpush.bf16.msrb.mxu0 %v2843_v39 }
 0x11e   :  { %v1161_v52 = vadd.f32 %v1160_v46, %v237_v27  ;;  %v1174_v53 = vpop.f32.mrf.mxu1 }
 0x120   :  { %v1186_v48 = vpop.f32.mrf.mxu2  ;;  %v1175_v57 = vadd.f32 %v1174_v53, %v1161_v52 }
 0x121   :  { %v1187_v51 = vadd.f32 %v1186_v48, %v1173_v43  ;;  %1971 = vmatpush.bf16.msrb.mxu0 %v2827_v47 }
 0x122   :  { %v1200_v4 = vpop.f32.mrf.mxu3 }
 0x123   :  { %v1237_v55 = vmax.f32 %v1187_v51, 0.0  ;;  %v1201_v5 = vadd.f32 %v1200_v4, %v238_v3 }
 0x124   :  { %1972 = vmatmul.bf16.vlgmr.msrb.gmra.mxu0 %v3598_v2 }
 0x125   :  { %v1992_v56 = vpack.c.bf16 %v1237_v55, %v1236_v49 }
 0x127   :  { %1996 = vst [vmem:[#allocation10] sm:$0xff] %v1992_v56 }
 0x128   :  { %v1188_v59 = vpop.f32.mrf.mxu2 }
 0x129   :  { %v1189_v61 = vadd.f32 %v1188_v59, %v1175_v57 }
 0x12a   :  { %v1202_v9 = vpop.f32.mrf.mxu3 }
 0x12b   :  { %v1243_v63 = vmax.f32 %v1189_v61, 0.0  ;;  %v1203_v12 = vadd.f32 %v1202_v9, %v238_v3 }
 0x12d   :  { %v1994_v1 = vpack.c.bf16 %v1243_v63, %v1242_v60 }
 0x12f   :  { %1998 = vst [vmem:[#allocation10 + $0xc] sm:$0xff] %v1994_v1 }
 0x135   :  { %v1214_v7 = vpop.f32.mrf.mxu0 }
 0x136   :  { %v1228_v6 = vpop.f32.mrf.mxu1  ;;  %v1215_v8 = vadd.f32 %v1214_v7, %v1201_v5 }
 0x138   :  { %v1229_v10 = vadd.f32 %v1228_v6, %v1215_v8 }
 0x13a   :  { %v1238_v11 = vmax.f32 %v1229_v10, 0.0 }
 0x13c   :  { %v1993_v13 = vpack.c.bf16 %v1238_v11, %v1238_v11 }
 0x13d   :  { %v1216_v14 = vpop.f32.mrf.mxu0 }
 0x13e   :  { %1997 = vst [vmem:[#allocation10 + $0x8] sm:$0xf] %v1993_v13  ;;  %v1217_v2 = vadd.f32 %v1216_v14, %v1203_v12  ;;  %v1230_v15 = vpop.f32.mrf.mxu1 }
 0x140   :  { %v1231_v16 = vadd.f32 %v1230_v15, %v1217_v2 }
 0x142   :  { %v1244_v17 = vmax.f32 %v1231_v16, 0.0 }
 0x144   :  { %v1995_v18 = vpack.c.bf16 %v1244_v17, %v1244_v17 }
 0x146   :  { %1999 = vst [vmem:[#allocation10 + $0x14] sm:$0xf] %v1995_v18 }
 0x147   :  { %2054 = dma.vmem_to_hbm [thread:$0]  %s2047_s28, 384, %s2049_s26, [#allocation4], %s3507_s9, %s3507_s9, %s3508_s10  }
 0x154   :  { %v1833_v19 = vpop.f32.mrf.mxu2 }
 0x156   :  { %v1875_v21 = vpop.f32.mrf.mxu1 }
 0x15c   :  { %v1835_v25 = vpop.f32.mrf.mxu2 }
 0x15e   :  { %v1877_v45 = vpop.f32.mrf.mxu1 }
 0x16a   :  { %v1847_v20 = vpop.f32.mrf.mxu3  ;;  %v1889_v22 = vpop.f32.mrf.mxu2 }
 0x16b   :  { %v1848_v24 = vadd.f32 %v1847_v20, %v1833_v19  ;;  %v1890_v62 = vadd.f32 %v1889_v22, %v1875_v21 }
 0x172   :  { %v1849_v23 = vpop.f32.mrf.mxu3  ;;  %v1891_v29 = vpop.f32.mrf.mxu2 }
 0x173   :  { %v1850_v32 = vadd.f32 %v1849_v23, %v1835_v25  ;;  %v1892_v33 = vadd.f32 %v1891_v29, %v1877_v45 }
 0x176   :  { %v1931_v34 = vpop.f32.mrf.mxu1 }
 0x17e   :  { %v1933_v44 = vpop.f32.mrf.mxu1 }
 0x181   :  { %v1861_v50 = vpop.f32.mrf.mxu0 }
 0x182   :  { %v1862_v27 = vadd.f32 %v1861_v50, %v1848_v24 }
 0x187   :  { %v1903_v26 = vpop.f32.mrf.mxu3 }
 0x188   :  { %v1904_v28 = vadd.f32 %v1903_v26, %v1890_v62  ;;  %v1945_v38 = vpop.f32.mrf.mxu2 }
 0x189   :  { %v1863_v30 = vpop.f32.mrf.mxu0 }
 0x18a   :  { %v2000_v31 = vpack.c.bf16 %v1904_v28, %v1862_v27  ;;  %v1864_v36 = vadd.f32 %v1863_v30, %v1850_v32 }
 0x18c   :  { %2004 = vst [vmem:[#allocation11] sm:$0xff] %v2000_v31 }
 0x18f   :  { %v1905_v35 = vpop.f32.mrf.mxu3 }
 0x190   :  { %v1906_v37 = vadd.f32 %v1905_v35, %v1892_v33  ;;  %v1947_v48 = vpop.f32.mrf.mxu2 }
 0x191   :  { %v1917_v39 = vpop.f32.mrf.mxu0 }
 0x192   :  { %v2002_v40 = vpack.c.bf16 %v1906_v37, %v1864_v36  ;;  %v1932_v41 = vadd.f32 %v1931_v34, %v1917_v39 }
 0x194   :  { %2006 = vst [vmem:[#allocation11 + $0xc] sm:$0xff] %v2002_v40  ;;  %v1946_v42 = vadd.f32 %v1945_v38, %v1932_v41 }
 0x196   :  { %v2001_v43 = vpack.c.bf16 %v1946_v42, %v1946_v42  ;;  %v1987_v52 = vpop.f32.mrf.mxu1 }
 0x197   :  { %v1959_v51 = vpop.f32.mrf.mxu3 }
 0x198   :  { %2005 = vst [vmem:[#allocation11 + $0x8] sm:$0xf] %v2001_v43 }
 0x199   :  { %v1919_v46 = vpop.f32.mrf.mxu0 }
 0x19a   :  { %v1934_v47 = vadd.f32 %v1933_v44, %v1919_v46 }
 0x19c   :  { %v1948_v0 = vadd.f32 %v1947_v48, %v1934_v47 }
 0x19e   :  { %v2003_v49 = vpack.c.bf16 %v1948_v0, %v1948_v0  ;;  %v1989_v59 = vpop.f32.mrf.mxu1 }
 0x19f   :  { %v1961_v56 = vpop.f32.mrf.mxu3 }
 0x1a0   :  { %2007 = vst [vmem:[#allocation11 + $0x14] sm:$0xf] %v2003_v49 }
 0x1a1   :  { %v1973_v53 = vpop.f32.mrf.mxu0  ;;  %2067 = dma.vmem_to_hbm [thread:$0]  %s2060_s3, 384, %s2062_s23, [#allocation12], %s3507_s9, %s3507_s9, %s3508_s10  }
 0x1a2   :  { %v1974_v54 = vadd.f32 %v1973_v53, %v1959_v51 }
 0x1a4   :  { %v1988_v55 = vadd.f32 %v1987_v52, %v1974_v54 }
 0x1a6   :  { %2008 = vxpose.xlu0.b32.start [1/2] (short) (narrow) %v1988_v55, 8 }
 0x1a9   :  { %v1975_v57 = vpop.f32.mrf.mxu0 }
 0x1aa   :  { %v1976_v58 = vadd.f32 %v1975_v57, %v1961_v56 }
 0x1ac   :  { %v1990_v60 = vadd.f32 %v1989_v59, %v1976_v58 }
 0x1ae   :  { %2009 = vxpose.xlu0.b32.end [2/2] (short) (narrow) %v1990_v60, 8 }
 0x24a   :  { %v2024_v61 = vpop.trf.xlu0 }
 0x24b   :  { %2041 = vst.msk [vmem:[#allocation13] sm:$0x1] %vm2040_vm0, %v2024_v61 }
 0x24c   :  { %2078 = dma.vmem_to_hbm [thread:$0]  %s2074_s5, 16, %s2076_s8, [#allocation12]  }
 0x24d   :  { %3499 = dma.done.wait [#allocation4], 384  }
 0x24e   :  { %3500 = vsyncadd [#allocation4], 4294966912 }
 0x24f   :  { %3501 = dma.done.wait [#allocation12], 400  }
 0x250   :  { %3502 = vsyncadd [#allocation12], 4294966896 }
 0x251   :  { %2091 = vsyncpa [#allocation3], 1 }
 0x252   :  { %2092 = vsyncpa [#allocation6], 1 }
 0x253   :  { %2093 = vsyncpa [#allocation9], 1 }
 0x254   :  { %2094 = vsyncpa [#allocation4], 1 }
 0x255   :  { %2095 = vsyncpa [#allocation12], 1 }

</bundles_post_ra>
